<compile_context>
chip_gen: v6e
topology: v6e:2x2x1
jax: 0.10.0
libtpu: 0.0.40
codegen_flags: <defaults>
</compile_context>

<pallas_src>
import functools

import jax
import jax.numpy as jnp
from jax import lax
from jax.experimental import pallas as pl
from jax.experimental.pallas import tpu as pltpu


def _dknn_kernel(scores_ref, g_ref, out_ref, z_sc, *, k, tau, m_tile, num_m_tiles):
    """One grid step: s_blk samples x bq_blk queries, N neighbors on lanes."""
    n = scores_ref.shape[-1]
    s_blk = g_ref.shape[0]
    inv_tau = 1.0 / float(tau)

    scores = scores_ref[...]                                   # (bq_blk, n), sample-invariant

    for s in range(s_blk):                                     # small static unroll over samples
        # Gumbel-perturbed log-scores, pre-scaled by 1/tau (both P_max terms are
        # linear in z, so scaling z once == dividing P_max by tau).
        z = (scores + g_ref[s]) * inv_tau                      # (bq_blk, n); g_ref[s] is (1, n)
        z_b = z[:, None, :]                                    # (bq_blk, 1, n), hoisted (loop-invariant)

        # ---- a_sum[b, j] = sum_m |z[b, j] - z[b, m]|  (at 1/tau scale) ----
        # Layout: j stays on lanes; the m tile rides the sublane axis so the
        # axis=-2 reduce lands directly in a_sum's lane-major layout.
        if num_m_tiles == 1:
            a_sum = jnp.sum(jnp.abs(z_b - z[:, :, None]), axis=-2)
        else:
            z_sc[...] = z                                      # lane-dense tile source in VMEM

            def m_body(t, acc):
                off = pl.multiple_of(t * m_tile, 128)
                blk = z_sc[:, pl.ds(off, m_tile)]              # (bq_blk, m_tile)
                diff = z_b - blk[:, :, None]                   # (bq_blk, m_tile, n)
                return acc + jnp.sum(jnp.abs(diff), axis=-2)   # reduce over the tile (sublane) axis

            a_sum = lax.fori_loop(0, num_m_tiles, m_body,
                                  jnp.zeros_like(z), unroll=2)

        # ---- accumulate the first k rows of the relaxed permutation matrix ----
        acc = jnp.zeros_like(z)
        for i in range(k):                                     # k static & small -> unrolled
            row = z * float(n - 1 - 2 * i) - a_sum             # == P_max[i] / tau
            row = row - jnp.max(row, axis=-1, keepdims=True)
            e = jnp.exp(row)
            denom = jnp.sum(e, axis=-1, keepdims=True)
            acc = acc + e * pl.reciprocal(denom, approx=True)  # EUP slot, frees VALU

        out_ref[s] = acc                                       # lane-dense (bq_blk, n) store


def _vmem_capacity_bytes():
    try:
        info = pltpu.get_tpu_info()
        cap = getattr(info, "vmem_capacity_bytes", None)
        if cap:
            return int(cap)
    except Exception:
        pass
    return 64 * 1024 * 1024        # conservative fallback (v7x per-core VMEM)


def _pick_s_blk(num_samples, cap=8):
    """Largest divisor of num_samples <= cap (amortizes per-grid-step overhead)."""
    for c in range(min(num_samples, cap), 0, -1):
        if num_samples % c == 0:
            return c
    return 1


def _pick_bq_blk(bq, min_blocks=1):
    """Multiple-of-8 divisor of bq; prefer >= min_blocks blocks of <= 128 rows."""
    if bq % 8 != 0:
        return bq                  # full extent (still a legal block)
    best = bq
    blk = min(bq, 128)
    blk -= blk % 8
    while blk >= 8:
        if bq % blk == 0:
            best = blk
            if bq // blk >= min_blocks:
                return blk
        blk -= 8
    return best


def _pick_m_tile(bq_blk, n, vmem_budget):
    """Largest multiple-of-128 divisor of n whose (bq_blk, m_tile, n) f32
    pairwise intermediate (~2 live copies) fits the VMEM budget."""
    fixed = 12 * bq_blk * n * 4            # z, a_sum, acc, scratch, I/O blocks, headroom
    per_col = 2 * bq_blk * n * 4           # bytes per unit of m_tile
    cap = max((vmem_budget - fixed) // per_col, 128)
    if n % 128 != 0 or cap >= n:
        return n                           # single tile (also handles small / odd N)
    best = 128
    t = 256
    while t <= min(cap, n):
        if n % t == 0:
            best = t
        t += 128
    return best


def dknn_forward(query, neighbors, gumbel, *, k, tau=1.0, m_tile=None):
    """query: (B_q, D), neighbors: (N, D), gumbel: (num_samples, 1, N)."""
    bq, d = query.shape
    n, d2 = neighbors.shape
    assert d == d2
    num_samples = gumbel.shape[0]
    assert gumbel.shape == (num_samples, 1, n)

    # Sample-invariant scores computed ONCE, outside the per-sample grid, as
    # exact squared distances (no cancellation-prone matmul identity needed).
    q32 = query.astype(jnp.float32)
    nb32 = neighbors.astype(jnp.float32)
    diffs = q32[:, None, :] - nb32[None, :, :]
    scores = -jnp.sum(diffs * diffs, axis=-1)                  # (bq, n) f32
    gumbel = gumbel.astype(jnp.float32)

    # --- grid blocking: samples blocked; B_q split only when needed for megacore ---
    s_blk = _pick_s_blk(num_samples)
    sample_steps = num_samples // s_blk
    bq_blk = _pick_bq_blk(bq, min_blocks=2 if sample_steps < 2 else 1)

    # --- generation-aware VMEM budget & pairwise tile size ---
    vmem_cap = _vmem_capacity_bytes()
    vmem_budget = min(int(vmem_cap * 0.7), 96 * 1024 * 1024)
    if m_tile is None:
        m_tile = _pick_m_tile(bq_blk, n, vmem_budget)
    else:
        m_tile = int(m_tile)
        assert n % m_tile == 0 and (m_tile == n or m_tile % 128 == 0), \
            "m_tile must divide N and be 128-aligned (or equal N)"
    num_m_tiles = max(n // m_tile, 1)
    # TODO(synk): for very large N (>~4K) an O(N log N) sort+prefix-sum form of
    # sum_m |z_j - z_m| would beat this O(N^2) tiled reduce.

    kernel = functools.partial(
        _dknn_kernel, k=int(k), tau=float(tau),
        m_tile=int(m_tile), num_m_tiles=int(num_m_tiles))

    return pl.pallas_call(
        kernel,
        out_shape=jax.ShapeDtypeStruct((num_samples, bq, n), jnp.float32),
        grid_spec=pltpu.PrefetchScalarGridSpec(
            num_scalar_prefetch=0,
            grid=(num_samples // s_blk, bq // bq_blk),
            in_specs=[
                pl.BlockSpec((bq_blk, n), lambda si, bi: (bi, 0)),        # scores (sample-invariant)
                pl.BlockSpec((s_blk, 1, n), lambda si, bi: (si, 0, 0)),   # per-sample-block gumbel
            ],
            out_specs=pl.BlockSpec((s_blk, bq_blk, n), lambda si, bi: (si, bi, 0)),
            scratch_shapes=[pltpu.VMEM((bq_blk, n), jnp.float32)],        # z tile source
        ),
        compiler_params=pltpu.CompilerParams(
            # No cross-step state: every (sample-block, query-block) pair is
            # independent, so both axes can be sharded across TensorCores.
            dimension_semantics=("parallel", "parallel"),
            vmem_limit_bytes=int(vmem_budget),
        ),
    )(scores, gumbel)


def dknn_reference(query, neighbors, gumbel, *, k, tau):
    """Pure-JAX reference matching the PyTorch module semantics."""
    diffs = query[:, None, :] - neighbors[None, :, :]
    scores = -jnp.sum(diffs * diffs, axis=-1)                               # (B_q, N)
    n = scores.shape[-1]
    z = scores[None, :, :] + gumbel                                         # (S, B_q, N)
    a_sum = jnp.sum(jnp.abs(z[..., :, None] - z[..., None, :]), axis=-1)    # (S, B_q, N)
    scale = (n - 1.0) - 2.0 * jnp.arange(n, dtype=jnp.float32)              # (n,)
    p_max = z[..., None, :] * scale[:, None] - a_sum[..., None, :]          # (S, B_q, n, N)
    p_hat = jax.nn.softmax(p_max / tau, axis=-1)
    return jnp.sum(p_hat[..., :k, :], axis=-2)                              # (S, B_q, N)


def _make_inputs(key, bq, n, d, num_samples):
    kq, kn, kg = jax.random.split(key, 3)
    query = jax.random.normal(kq, (bq, d), dtype=jnp.float32)
    neighbors = jax.random.normal(kn, (n, d), dtype=jnp.float32)
    # PL.rsample Gumbel noise (torch RNG stream not reproducible; generated in
    # glue), shared across queries as in the reference: shape (S, 1, N).
    u = jax.random.uniform(kg, (num_samples, 1, n), dtype=jnp.float32)
    gumbel = -jnp.log(-jnp.log(u + 1e-20) + 1e-20)
    return query, neighbors, gumbel


def _check(out, query, neighbors, gumbel, *, k, tau):
    assert out.dtype == jnp.float32
    assert bool(jnp.all(jnp.isfinite(out)))
    # each relaxed-permutation row sums to ~1, so each (sample, query) sums to ~k
    assert bool(jnp.allclose(jnp.sum(out, axis=-1), float(k), atol=2e-2))
    ref = dknn_reference(query, neighbors, gumbel, k=k, tau=tau)
    assert bool(jnp.allclose(out, ref, atol=3e-2)), float(jnp.max(jnp.abs(out - ref)))


if __name__ == "__main__":
    key = jax.random.PRNGKey(0)
    k1, k2 = jax.random.split(key)

    # --- primary case: single-tile pairwise reduce, one grid step ---
    B_q, N, D = 8, 128, 32
    num_samples, k, tau = 2, 5, 1.0
    query, neighbors, gumbel = _make_inputs(k1, B_q, N, D, num_samples)
    out = dknn_forward(query, neighbors, gumbel, k=k, tau=tau)
    out = jax.block_until_ready(out)
    assert out.shape == (num_samples, B_q, N), out.shape
    _check(out, query, neighbors, gumbel, k=k, tau=tau)

    # --- coverage case: forced m tiling (fori_loop + scratch) and 2 B_q blocks ---
    B_q2, N2, D2, S2, k2_ = 16, 256, 32, 3, 3
    query2, neighbors2, gumbel2 = _make_inputs(k2, B_q2, N2, D2, S2)
    out2 = dknn_forward(query2, neighbors2, gumbel2, k=k2_, tau=tau, m_tile=128)
    out2 = jax.block_until_ready(out2)
    assert out2.shape == (S2, B_q2, N2), out2.shape
    _check(out2, query2, neighbors2, gumbel2, k=k2_, tau=tau)

    print("KERNEL_OK")
</pallas_src>

<mosaic_0001>
module attributes {stable_mosaic.version = 11 : i64} {
  func.func @_dknn_kernel(%arg0: i32, %arg1: i32, %arg2: memref<8x128xf32, #tpu.memory_space<vmem>>, %arg3: memref<2x1x128xf32, #tpu.memory_space<vmem>>, %arg4: memref<2x8x128xf32, #tpu.memory_space<vmem>>, %arg5: memref<8x128xf32, #tpu.memory_space<vmem>>) attributes {dimension_semantics = [#tpu.dimension_semantics<parallel>, #tpu.dimension_semantics<parallel>], iteration_bounds = array<i64: 1, 1>, scalar_prefetch = 0 : i64, scratch_operands = 1 : i64, tpu.core_type = #tpu.core_type<tc>, window_params = [{transform_indices = @transform_0, window_bounds = array<i64: 8, 128>}, {transform_indices = @transform_1, window_bounds = array<i64: 2, 1, 128>}, {transform_indices = @transform_2, window_bounds = array<i64: 2, 8, 128>}]} {
    %c0 = arith.constant 0 : index
    %c0_0 = arith.constant 0 : index
    %0 = vector.load %arg2[%c0, %c0_0] : memref<8x128xf32, #tpu.memory_space<vmem>>, vector<8x128xf32>
    %c0_1 = arith.constant 0 : index
    %c0_2 = arith.constant 0 : index
    %c0_3 = arith.constant 0 : index
    %1 = vector.load %arg3[%c0_1, %c0_2, %c0_3] : memref<2x1x128xf32, #tpu.memory_space<vmem>>, vector<1x1x128xf32>
    %2 = vector.shape_cast %1 : vector<1x1x128xf32> to vector<1x128xf32>
    %3 = vector.broadcast %2 : vector<1x128xf32> to vector<8x128xf32>
    %4 = arith.addf %0, %3 : vector<8x128xf32>
    %cst = arith.constant 1.000000e+00 : f32
    %5 = vector.broadcast %cst : f32 to vector<8x128xf32>
    %6 = arith.mulf %4, %5 : vector<8x128xf32>
    %7 = vector.shape_cast %6 : vector<8x128xf32> to vector<8x1x128xf32>
    %8 = vector.shape_cast %6 : vector<8x128xf32> to vector<8x128x1xf32>
    %9 = vector.broadcast %7 : vector<8x1x128xf32> to vector<8x128x128xf32>
    %10 = vector.broadcast %8 : vector<8x128x1xf32> to vector<8x128x128xf32>
    %11 = arith.subf %9, %10 : vector<8x128x128xf32>
    %12 = math.absf %11 : vector<8x128x128xf32>
    %cst_4 = arith.constant dense<0.000000e+00> : vector<8x128xf32>
    %13 = vector.multi_reduction <add>, %12, %cst_4 [1] : vector<8x128x128xf32> to vector<8x128xf32>
    %cst_5 = arith.constant 0.000000e+00 : f32
    %14 = vector.broadcast %cst_5 : f32 to vector<8x128xf32>
    %cst_6 = arith.constant 1.270000e+02 : f32
    %15 = vector.broadcast %cst_6 : f32 to vector<8x128xf32>
    %16 = arith.mulf %6, %15 : vector<8x128xf32>
    %17 = arith.subf %16, %13 : vector<8x128xf32>
    %cst_7 = arith.constant dense<0xFF800000> : vector<8xf32>
    %18 = vector.multi_reduction <maximumf>, %17, %cst_7 [1] : vector<8x128xf32> to vector<8xf32>
    %19 = vector.shape_cast %18 : vector<8xf32> to vector<8x1xf32>
    %20 = vector.broadcast %19 : vector<8x1xf32> to vector<8x128xf32>
    %21 = arith.subf %17, %20 : vector<8x128xf32>
    %22 = math.exp %21 : vector<8x128xf32>
    %cst_8 = arith.constant dense<0.000000e+00> : vector<8xf32>
    %23 = vector.multi_reduction <add>, %22, %cst_8 [1] : vector<8x128xf32> to vector<8xf32>
    %24 = vector.shape_cast %23 : vector<8xf32> to vector<8x1xf32>
    %25 = tpu.reciprocal %24 {approx = true} : vector<8x1xf32> -> vector<8x1xf32>
    %26 = vector.broadcast %25 : vector<8x1xf32> to vector<8x128xf32>
    %27 = arith.mulf %22, %26 : vector<8x128xf32>
    %28 = arith.addf %14, %27 : vector<8x128xf32>
    %cst_9 = arith.constant 1.250000e+02 : f32
    %29 = vector.broadcast %cst_9 : f32 to vector<8x128xf32>
    %30 = arith.mulf %6, %29 : vector<8x128xf32>
    %31 = arith.subf %30, %13 : vector<8x128xf32>
    %cst_10 = arith.constant dense<0xFF800000> : vector<8xf32>
    %32 = vector.multi_reduction <maximumf>, %31, %cst_10 [1] : vector<8x128xf32> to vector<8xf32>
    %33 = vector.shape_cast %32 : vector<8xf32> to vector<8x1xf32>
    %34 = vector.broadcast %33 : vector<8x1xf32> to vector<8x128xf32>
    %35 = arith.subf %31, %34 : vector<8x128xf32>
    %36 = math.exp %35 : vector<8x128xf32>
    %cst_11 = arith.constant dense<0.000000e+00> : vector<8xf32>
    %37 = vector.multi_reduction <add>, %36, %cst_11 [1] : vector<8x128xf32> to vector<8xf32>
    %38 = vector.shape_cast %37 : vector<8xf32> to vector<8x1xf32>
    %39 = tpu.reciprocal %38 {approx = true} : vector<8x1xf32> -> vector<8x1xf32>
    %40 = vector.broadcast %39 : vector<8x1xf32> to vector<8x128xf32>
    %41 = arith.mulf %36, %40 : vector<8x128xf32>
    %42 = arith.addf %28, %41 : vector<8x128xf32>
    %cst_12 = arith.constant 1.230000e+02 : f32
    %43 = vector.broadcast %cst_12 : f32 to vector<8x128xf32>
    %44 = arith.mulf %6, %43 : vector<8x128xf32>
    %45 = arith.subf %44, %13 : vector<8x128xf32>
    %cst_13 = arith.constant dense<0xFF800000> : vector<8xf32>
    %46 = vector.multi_reduction <maximumf>, %45, %cst_13 [1] : vector<8x128xf32> to vector<8xf32>
    %47 = vector.shape_cast %46 : vector<8xf32> to vector<8x1xf32>
    %48 = vector.broadcast %47 : vector<8x1xf32> to vector<8x128xf32>
    %49 = arith.subf %45, %48 : vector<8x128xf32>
    %50 = math.exp %49 : vector<8x128xf32>
    %cst_14 = arith.constant dense<0.000000e+00> : vector<8xf32>
    %51 = vector.multi_reduction <add>, %50, %cst_14 [1] : vector<8x128xf32> to vector<8xf32>
    %52 = vector.shape_cast %51 : vector<8xf32> to vector<8x1xf32>
    %53 = tpu.reciprocal %52 {approx = true} : vector<8x1xf32> -> vector<8x1xf32>
    %54 = vector.broadcast %53 : vector<8x1xf32> to vector<8x128xf32>
    %55 = arith.mulf %50, %54 : vector<8x128xf32>
    %56 = arith.addf %42, %55 : vector<8x128xf32>
    %cst_15 = arith.constant 1.210000e+02 : f32
    %57 = vector.broadcast %cst_15 : f32 to vector<8x128xf32>
    %58 = arith.mulf %6, %57 : vector<8x128xf32>
    %59 = arith.subf %58, %13 : vector<8x128xf32>
    %cst_16 = arith.constant dense<0xFF800000> : vector<8xf32>
    %60 = vector.multi_reduction <maximumf>, %59, %cst_16 [1] : vector<8x128xf32> to vector<8xf32>
    %61 = vector.shape_cast %60 : vector<8xf32> to vector<8x1xf32>
    %62 = vector.broadcast %61 : vector<8x1xf32> to vector<8x128xf32>
    %63 = arith.subf %59, %62 : vector<8x128xf32>
    %64 = math.exp %63 : vector<8x128xf32>
    %cst_17 = arith.constant dense<0.000000e+00> : vector<8xf32>
    %65 = vector.multi_reduction <add>, %64, %cst_17 [1] : vector<8x128xf32> to vector<8xf32>
    %66 = vector.shape_cast %65 : vector<8xf32> to vector<8x1xf32>
    %67 = tpu.reciprocal %66 {approx = true} : vector<8x1xf32> -> vector<8x1xf32>
    %68 = vector.broadcast %67 : vector<8x1xf32> to vector<8x128xf32>
    %69 = arith.mulf %64, %68 : vector<8x128xf32>
    %70 = arith.addf %56, %69 : vector<8x128xf32>
    %cst_18 = arith.constant 1.190000e+02 : f32
    %71 = vector.broadcast %cst_18 : f32 to vector<8x128xf32>
    %72 = arith.mulf %6, %71 : vector<8x128xf32>
    %73 = arith.subf %72, %13 : vector<8x128xf32>
    %cst_19 = arith.constant dense<0xFF800000> : vector<8xf32>
    %74 = vector.multi_reduction <maximumf>, %73, %cst_19 [1] : vector<8x128xf32> to vector<8xf32>
    %75 = vector.shape_cast %74 : vector<8xf32> to vector<8x1xf32>
    %76 = vector.broadcast %75 : vector<8x1xf32> to vector<8x128xf32>
    %77 = arith.subf %73, %76 : vector<8x128xf32>
    %78 = math.exp %77 : vector<8x128xf32>
    %cst_20 = arith.constant dense<0.000000e+00> : vector<8xf32>
    %79 = vector.multi_reduction <add>, %78, %cst_20 [1] : vector<8x128xf32> to vector<8xf32>
    %80 = vector.shape_cast %79 : vector<8xf32> to vector<8x1xf32>
    %81 = tpu.reciprocal %80 {approx = true} : vector<8x1xf32> -> vector<8x1xf32>
    %82 = vector.broadcast %81 : vector<8x1xf32> to vector<8x128xf32>
    %83 = arith.mulf %78, %82 : vector<8x128xf32>
    %84 = arith.addf %70, %83 : vector<8x128xf32>
    %c0_21 = arith.constant 0 : index
    %c0_22 = arith.constant 0 : index
    %c0_23 = arith.constant 0 : index
    %85 = vector.load %arg4[%c0_21, %c0_22, %c0_23] : memref<2x8x128xf32, #tpu.memory_space<vmem>>, vector<1x8x128xf32>
    %86 = vector.shape_cast %85 : vector<1x8x128xf32> to vector<8x128xf32>
    %87 = vector.shape_cast %84 : vector<8x128xf32> to vector<1x8x128xf32>
    tpu.vector_store %arg4[%c0_21, %c0_22, %c0_23], %87 {strides = array<i32>} : memref<2x8x128xf32, #tpu.memory_space<vmem>>, vector<1x8x128xf32>,
    %c1 = arith.constant 1 : index
    %c0_24 = arith.constant 0 : index
    %c0_25 = arith.constant 0 : index
    %88 = vector.load %arg3[%c1, %c0_24, %c0_25] : memref<2x1x128xf32, #tpu.memory_space<vmem>>, vector<1x1x128xf32>
    %89 = vector.shape_cast %88 : vector<1x1x128xf32> to vector<1x128xf32>
    %90 = vector.broadcast %89 : vector<1x128xf32> to vector<8x128xf32>
    %91 = arith.addf %0, %90 : vector<8x128xf32>
    %cst_26 = arith.constant 1.000000e+00 : f32
    %92 = vector.broadcast %cst_26 : f32 to vector<8x128xf32>
    %93 = arith.mulf %91, %92 : vector<8x128xf32>
    %94 = vector.shape_cast %93 : vector<8x128xf32> to vector<8x1x128xf32>
    %95 = vector.shape_cast %93 : vector<8x128xf32> to vector<8x128x1xf32>
    %96 = vector.broadcast %94 : vector<8x1x128xf32> to vector<8x128x128xf32>
    %97 = vector.broadcast %95 : vector<8x128x1xf32> to vector<8x128x128xf32>
    %98 = arith.subf %96, %97 : vector<8x128x128xf32>
    %99 = math.absf %98 : vector<8x128x128xf32>
    %cst_27 = arith.constant dense<0.000000e+00> : vector<8x128xf32>
    %100 = vector.multi_reduction <add>, %99, %cst_27 [1] : vector<8x128x128xf32> to vector<8x128xf32>
    %cst_28 = arith.constant 0.000000e+00 : f32
    %101 = vector.broadcast %cst_28 : f32 to vector<8x128xf32>
    %cst_29 = arith.constant 1.270000e+02 : f32
    %102 = vector.broadcast %cst_29 : f32 to vector<8x128xf32>
    %103 = arith.mulf %93, %102 : vector<8x128xf32>
    %104 = arith.subf %103, %100 : vector<8x128xf32>
    %cst_30 = arith.constant dense<0xFF800000> : vector<8xf32>
    %105 = vector.multi_reduction <maximumf>, %104, %cst_30 [1] : vector<8x128xf32> to vector<8xf32>
    %106 = vector.shape_cast %105 : vector<8xf32> to vector<8x1xf32>
    %107 = vector.broadcast %106 : vector<8x1xf32> to vector<8x128xf32>
    %108 = arith.subf %104, %107 : vector<8x128xf32>
    %109 = math.exp %108 : vector<8x128xf32>
    %cst_31 = arith.constant dense<0.000000e+00> : vector<8xf32>
    %110 = vector.multi_reduction <add>, %109, %cst_31 [1] : vector<8x128xf32> to vector<8xf32>
    %111 = vector.shape_cast %110 : vector<8xf32> to vector<8x1xf32>
    %112 = tpu.reciprocal %111 {approx = true} : vector<8x1xf32> -> vector<8x1xf32>
    %113 = vector.broadcast %112 : vector<8x1xf32> to vector<8x128xf32>
    %114 = arith.mulf %109, %113 : vector<8x128xf32>
    %115 = arith.addf %101, %114 : vector<8x128xf32>
    %cst_32 = arith.constant 1.250000e+02 : f32
    %116 = vector.broadcast %cst_32 : f32 to vector<8x128xf32>
    %117 = arith.mulf %93, %116 : vector<8x128xf32>
    %118 = arith.subf %117, %100 : vector<8x128xf32>
    %cst_33 = arith.constant dense<0xFF800000> : vector<8xf32>
    %119 = vector.multi_reduction <maximumf>, %118, %cst_33 [1] : vector<8x128xf32> to vector<8xf32>
    %120 = vector.shape_cast %119 : vector<8xf32> to vector<8x1xf32>
    %121 = vector.broadcast %120 : vector<8x1xf32> to vector<8x128xf32>
    %122 = arith.subf %118, %121 : vector<8x128xf32>
    %123 = math.exp %122 : vector<8x128xf32>
    %cst_34 = arith.constant dense<0.000000e+00> : vector<8xf32>
    %124 = vector.multi_reduction <add>, %123, %cst_34 [1] : vector<8x128xf32> to vector<8xf32>
    %125 = vector.shape_cast %124 : vector<8xf32> to vector<8x1xf32>
    %126 = tpu.reciprocal %125 {approx = true} : vector<8x1xf32> -> vector<8x1xf32>
    %127 = vector.broadcast %126 : vector<8x1xf32> to vector<8x128xf32>
    %128 = arith.mulf %123, %127 : vector<8x128xf32>
    %129 = arith.addf %115, %128 : vector<8x128xf32>
    %cst_35 = arith.constant 1.230000e+02 : f32
    %130 = vector.broadcast %cst_35 : f32 to vector<8x128xf32>
    %131 = arith.mulf %93, %130 : vector<8x128xf32>
    %132 = arith.subf %131, %100 : vector<8x128xf32>
    %cst_36 = arith.constant dense<0xFF800000> : vector<8xf32>
    %133 = vector.multi_reduction <maximumf>, %132, %cst_36 [1] : vector<8x128xf32> to vector<8xf32>
    %134 = vector.shape_cast %133 : vector<8xf32> to vector<8x1xf32>
    %135 = vector.broadcast %134 : vector<8x1xf32> to vector<8x128xf32>
    %136 = arith.subf %132, %135 : vector<8x128xf32>
    %137 = math.exp %136 : vector<8x128xf32>
    %cst_37 = arith.constant dense<0.000000e+00> : vector<8xf32>
    %138 = vector.multi_reduction <add>, %137, %cst_37 [1] : vector<8x128xf32> to vector<8xf32>
    %139 = vector.shape_cast %138 : vector<8xf32> to vector<8x1xf32>
    %140 = tpu.reciprocal %139 {approx = true} : vector<8x1xf32> -> vector<8x1xf32>
    %141 = vector.broadcast %140 : vector<8x1xf32> to vector<8x128xf32>
    %142 = arith.mulf %137, %141 : vector<8x128xf32>
    %143 = arith.addf %129, %142 : vector<8x128xf32>
    %cst_38 = arith.constant 1.210000e+02 : f32
    %144 = vector.broadcast %cst_38 : f32 to vector<8x128xf32>
    %145 = arith.mulf %93, %144 : vector<8x128xf32>
    %146 = arith.subf %145, %100 : vector<8x128xf32>
    %cst_39 = arith.constant dense<0xFF800000> : vector<8xf32>
    %147 = vector.multi_reduction <maximumf>, %146, %cst_39 [1] : vector<8x128xf32> to vector<8xf32>
    %148 = vector.shape_cast %147 : vector<8xf32> to vector<8x1xf32>
    %149 = vector.broadcast %148 : vector<8x1xf32> to vector<8x128xf32>
    %150 = arith.subf %146, %149 : vector<8x128xf32>
    %151 = math.exp %150 : vector<8x128xf32>
    %cst_40 = arith.constant dense<0.000000e+00> : vector<8xf32>
    %152 = vector.multi_reduction <add>, %151, %cst_40 [1] : vector<8x128xf32> to vector<8xf32>
    %153 = vector.shape_cast %152 : vector<8xf32> to vector<8x1xf32>
    %154 = tpu.reciprocal %153 {approx = true} : vector<8x1xf32> -> vector<8x1xf32>
    %155 = vector.broadcast %154 : vector<8x1xf32> to vector<8x128xf32>
    %156 = arith.mulf %151, %155 : vector<8x128xf32>
    %157 = arith.addf %143, %156 : vector<8x128xf32>
    %cst_41 = arith.constant 1.190000e+02 : f32
    %158 = vector.broadcast %cst_41 : f32 to vector<8x128xf32>
    %159 = arith.mulf %93, %158 : vector<8x128xf32>
    %160 = arith.subf %159, %100 : vector<8x128xf32>
    %cst_42 = arith.constant dense<0xFF800000> : vector<8xf32>
    %161 = vector.multi_reduction <maximumf>, %160, %cst_42 [1] : vector<8x128xf32> to vector<8xf32>
    %162 = vector.shape_cast %161 : vector<8xf32> to vector<8x1xf32>
    %163 = vector.broadcast %162 : vector<8x1xf32> to vector<8x128xf32>
    %164 = arith.subf %160, %163 : vector<8x128xf32>
    %165 = math.exp %164 : vector<8x128xf32>
    %cst_43 = arith.constant dense<0.000000e+00> : vector<8xf32>
    %166 = vector.multi_reduction <add>, %165, %cst_43 [1] : vector<8x128xf32> to vector<8xf32>
    %167 = vector.shape_cast %166 : vector<8xf32> to vector<8x1xf32>
    %168 = tpu.reciprocal %167 {approx = true} : vector<8x1xf32> -> vector<8x1xf32>
    %169 = vector.broadcast %168 : vector<8x1xf32> to vector<8x128xf32>
    %170 = arith.mulf %165, %169 : vector<8x128xf32>
    %171 = arith.addf %157, %170 : vector<8x128xf32>
    %c1_44 = arith.constant 1 : index
    %c0_45 = arith.constant 0 : index
    %c0_46 = arith.constant 0 : index
    %172 = vector.load %arg4[%c1_44, %c0_45, %c0_46] : memref<2x8x128xf32, #tpu.memory_space<vmem>>, vector<1x8x128xf32>
    %173 = vector.shape_cast %172 : vector<1x8x128xf32> to vector<8x128xf32>
    %174 = vector.shape_cast %171 : vector<8x128xf32> to vector<1x8x128xf32>
    tpu.vector_store %arg4[%c1_44, %c0_45, %c0_46], %174 {strides = array<i32>} : memref<2x8x128xf32, #tpu.memory_space<vmem>>, vector<1x8x128xf32>,
    return
  }
  func.func @transform_0(%arg0: i32, %arg1: i32) -> (i32, i32) {
    %c0_i32 = arith.constant 0 : i32
    %c0_i32_0 = arith.constant 0 : i32
    return %arg1, %c0_i32 : i32, i32
  }
  func.func @transform_1(%arg0: i32, %arg1: i32) -> (i32, i32, i32) {
    %c0_i32 = arith.constant 0 : i32
    %c0_i32_0 = arith.constant 0 : i32
    %c0_i32_1 = arith.constant 0 : i32
    return %arg0, %c0_i32, %c0_i32_0 : i32, i32, i32
  }
  func.func @transform_2(%arg0: i32, %arg1: i32) -> (i32, i32, i32) {
    %c0_i32 = arith.constant 0 : i32
    %c0_i32_0 = arith.constant 0 : i32
    return %arg0, %arg1, %c0_i32 : i32, i32, i32
  }
}

</mosaic_0001>

<bundles_post_ra>
// kernel: tpu_custom_call.1
= control target key start
LH: loop header
LB: loop body
LE: loop exit
PB: predicated region body
PF: predicated region fallthrough
CT: control target
= control target key end

     0   :  { %7 = vsyncpa [#allocation4], 0  ;;  %s3629_s0 = inlined_call_operand.hbm [shape: f32[8,128], index: 0, kind: input, shape index: {}]   ;;  %s3630_s1 = inlined_call_operand.hbm [shape: f32[2,1,128], index: 1, kind: input, shape index: {}]   ;;  %s3631_s2 = inlined_call_operand.hbm [shape: f32[2,8,128], index: 2, kind: output, shape index: {}]  }
   0x1   :  { %8 = vsyncpa [#allocation7], 0 }
   0x2   :  { %9 = vsyncpa [#allocation5], 0  ;;  %s2453_s9 = smov [#allocation3]   ;;  %s2454_s11 = smov [#allocation6]  }
   0x3   :  { %s16_s10 = sshll.u32 %s2453_s9, 4  ;;  %s25_s12 = sshll.u32 %s2454_s11, 4  ;;  %s17_s10 = int_to_ptr.vmem [resolvable:$true] %s16_s10  ;;  %s26_s12 = int_to_ptr.vmem [resolvable:$true] %s25_s12 }
   0x4   :  { %s2395_s13 = scalar_lea.vmem %s17_s10, 128  ;;  %p2400_p1 = scmp.lt.s32.totalorder %s17_s10, %s17_s10 }
   0x5   :  { %p2396_p0 = scmp.ne.s32.totalorder %s17_s10, %s2395_s13  ;;  %p2401_p2 = scmp.lt.s32.totalorder %s2395_s13, %s2395_s13 }
   0x7   :  { %p2402_p3 = por %p2401_p2, %p2400_p1 }
   0x9   :  { %p2403_p4 = pnand %p2402_p3, %p2396_p0 }
   0xb   :  { %2406 = shalt.err (!%p2403_p4)
}
   0xc   :  { %19 = dma.hbm_to_vmem [thread:$0]  %s3629_s0, 128, %s17_s10, [#allocation4]  }
   0xd   :  { %s2415_s16 = scalar_lea.vmem %s26_s12, 32  ;;  %p2420_p6 = scmp.lt.s32.totalorder %s26_s12, %s26_s12 }
   0xe   :  { %p2416_p5 = scmp.ne.s32.totalorder %s26_s12, %s2415_s16  ;;  %p2421_p7 = scmp.lt.s32.totalorder %s2415_s16, %s2415_s16 }
  0x10   :  { %p2422_p8 = por %p2421_p7, %p2420_p6 }
  0x12   :  { %p2423_p9 = pnand %p2422_p8, %p2416_p5 }
  0x14   :  { %2426 = shalt.err (!%p2423_p9)
}
  0x15   :  { %s2455_s17 = smov 16   ;;  %s2456_s18 = smov 1  }
  0x16   :  { %31 = dma.hbm_to_vmem [thread:$0]  %s3630_s1, 32, %s26_s12, [#allocation7], %s2455_s17, %s2455_s17, %s2456_s18  }
  0x17   :  { %2447 = dma.done.wait [#allocation4], 128  }
  0x18   :  { %2448 = vsyncadd [#allocation4], 4294967168 }
  0x19   :  { %2449 = dma.done.wait [#allocation7], 32  }
  0x1a   :  { %2450 = vsyncadd [#allocation7], 4294967264  ;;  %v52_v0 = vlaneseq  ;;  %v38_v3 = vld [vmem:[#allocation3] sm:$0xff]  ;;  %v2336_v4 = vld [vmem:[#allocation6] ss:$0 sm:$0xff]  ;;  %vm1106_vm0 = vcmask 1041409  }
  0x1b   :  { %v2487_v5 = vadd.f32 %v2336_v4, %v38_v3  ;;  %vm1108_vm1 = vcmask 1042434   ;;  %vm1110_vm2 = vcmask 1043459   ;;  %vm1112_vm3 = vcmask 1044484   ;;  %s2458_s0 = smov [#allocation8]  }
  0x1c   :  { %v2482_v1 = vshrl.u32 %v52_v0, 7  ;;  %vm1114_vm4 = vcmask 1045509   ;;  %vm1116_vm5 = vcmask 1046534   ;;  %vm1118_vm6 = vcmask 1047559   ;;  %s2323_s1 = sshll.u32 %s2458_s0, 4  ;;  %s2324_s1 = int_to_ptr.vmem [resolvable:$true] %s2323_s1 }
  0x1d   :  { %3649 = vst [vmem:[#allocation13_spill] sm:$0xff] %v2487_v5  ;;  %s2427_s21 = scalar_lea.vmem %s2324_s1, 256  ;;  %p2432_p11 = scmp.lt.s32.totalorder %s2324_s1, %s2324_s1 }
  0x1e   :  { %3648 = vst [vmem:[#allocation12_spill] sm:$0xff] %v2482_v1  ;;  %v2485_v2 = vsub.s32 0, %v2482_v1  ;;  %v3637_v7 = vsub.s32 1, %v2482_v1  ;;  %v3636_v9 = vsub.s32 2, %v2482_v1  ;;  %v3635_v11 = vsub.s32 3, %v2482_v1  ;;  %p2428_p10 = scmp.ne.s32.totalorder %s2324_s1, %s2427_s21  ;;  %p2433_p12 = scmp.lt.s32.totalorder %s2427_s21, %s2427_s21 }
  0x1f   :  { %v3634_v17 = vsub.s32 4, %v2482_v1  ;;  %v3633_v35 = vsub.s32 5, %v2482_v1  ;;  %v3632_v53 = vsub.s32 6, %v2482_v1 }
  0x20   :  { %v100_v6 = vrot.slane %v2487_v5, %v2485_v2  ;;  %v167_v8 = vrot.slane %v2487_v5, %v3637_v7  ;;  %v234_v10 = vrot.slane %v2487_v5, %v3636_v9  ;;  %v301_v12 = vrot.slane %v2487_v5, %v3635_v11  ;;  %p2434_p13 = por %p2433_p12, %p2432_p11 }
  0x21   :  { %v368_v20 = vrot.slane %v2487_v5, %v3634_v17  ;;  %v435_v38 = vrot.slane %v2487_v5, %v3633_v35  ;;  %v502_v56 = vrot.slane %v2487_v5, %v3632_v53  ;;  %v3638_v35 = vsub.s32 7, %v2482_v1 }
  0x22   :  { %110 = vbcast.lane.b32.xlu1 %v100_v6, 272  ;;  %102 = vbcast.lane.b32.xlu0 %v100_v6, 256  ;;  %p2435_p0 = pnand %p2434_p13, %p2428_p10 }
  0x26   :  { %114 = vbcast.lane.b32.xlu1 %v100_v6, 280  ;;  %106 = vbcast.lane.b32.xlu0 %v100_v6, 264 }
  0x2a   :  { %122 = vbcast.lane.b32.xlu1 %v100_v6, 296  ;;  %118 = vbcast.lane.b32.xlu0 %v100_v6, 288 }
  0x2e   :  { %130 = vbcast.lane.b32.xlu1 %v100_v6, 312  ;;  %126 = vbcast.lane.b32.xlu0 %v100_v6, 304 }
  0x32   :  { %138 = vbcast.lane.b32.xlu1 %v100_v6, 328  ;;  %134 = vbcast.lane.b32.xlu0 %v100_v6, 320 }
  0x36   :  { %146 = vbcast.lane.b32.xlu1 %v100_v6, 344  ;;  %142 = vbcast.lane.b32.xlu0 %v100_v6, 336 }
  0x3a   :  { %154 = vbcast.lane.b32.xlu1 %v100_v6, 360  ;;  %150 = vbcast.lane.b32.xlu0 %v100_v6, 352 }
  0x3e   :  { %162 = vbcast.lane.b32.xlu1 %v100_v6, 376  ;;  %158 = vbcast.lane.b32.xlu0 %v100_v6, 368 }
  0x42   :  { %173 = vbcast.lane.b32.xlu1 %v167_v8, 264  ;;  %169 = vbcast.lane.b32.xlu0 %v167_v8, 256 }
  0x46   :  { %181 = vbcast.lane.b32.xlu1 %v167_v8, 280  ;;  %177 = vbcast.lane.b32.xlu0 %v167_v8, 272 }
  0x4a   :  { %189 = vbcast.lane.b32.xlu1 %v167_v8, 296  ;;  %185 = vbcast.lane.b32.xlu0 %v167_v8, 288 }
  0x4e   :  { %197 = vbcast.lane.b32.xlu1 %v167_v8, 312  ;;  %193 = vbcast.lane.b32.xlu0 %v167_v8, 304 }
  0x52   :  { %205 = vbcast.lane.b32.xlu1 %v167_v8, 328  ;;  %201 = vbcast.lane.b32.xlu0 %v167_v8, 320 }
  0x56   :  { %213 = vbcast.lane.b32.xlu1 %v167_v8, 344  ;;  %209 = vbcast.lane.b32.xlu0 %v167_v8, 336 }
  0x5a   :  { %221 = vbcast.lane.b32.xlu1 %v167_v8, 360  ;;  %217 = vbcast.lane.b32.xlu0 %v167_v8, 352 }
  0x5e   :  { %229 = vbcast.lane.b32.xlu1 %v167_v8, 376  ;;  %225 = vbcast.lane.b32.xlu0 %v167_v8, 368 }
  0x62   :  { %240 = vbcast.lane.b32.xlu1 %v234_v10, 264  ;;  %236 = vbcast.lane.b32.xlu0 %v234_v10, 256 }
  0x66   :  { %248 = vbcast.lane.b32.xlu1 %v234_v10, 280  ;;  %244 = vbcast.lane.b32.xlu0 %v234_v10, 272 }
  0x6a   :  { %256 = vbcast.lane.b32.xlu1 %v234_v10, 296  ;;  %252 = vbcast.lane.b32.xlu0 %v234_v10, 288 }
  0x6e   :  { %264 = vbcast.lane.b32.xlu1 %v234_v10, 312  ;;  %260 = vbcast.lane.b32.xlu0 %v234_v10, 304 }
  0x72   :  { %272 = vbcast.lane.b32.xlu1 %v234_v10, 328  ;;  %268 = vbcast.lane.b32.xlu0 %v234_v10, 320 }
  0x76   :  { %280 = vbcast.lane.b32.xlu1 %v234_v10, 344  ;;  %276 = vbcast.lane.b32.xlu0 %v234_v10, 336 }
  0x7a   :  { %288 = vbcast.lane.b32.xlu1 %v234_v10, 360  ;;  %284 = vbcast.lane.b32.xlu0 %v234_v10, 352 }
  0x7e   :  { %296 = vbcast.lane.b32.xlu1 %v234_v10, 376  ;;  %292 = vbcast.lane.b32.xlu0 %v234_v10, 368  ;;  %v2457_v10 = vmov 1966171168  }
  0x82   :  { %307 = vbcast.lane.b32.xlu1 %v301_v12, 264  ;;  %303 = vbcast.lane.b32.xlu0 %v301_v12, 256 }
  0x86   :  { %315 = vbcast.lane.b32.xlu1 %v301_v12, 280  ;;  %311 = vbcast.lane.b32.xlu0 %v301_v12, 272 }
  0x8a   :  { %323 = vbcast.lane.b32.xlu1 %v301_v12, 296  ;;  %319 = vbcast.lane.b32.xlu0 %v301_v12, 288 }
  0x8e   :  { %331 = vbcast.lane.b32.xlu1 %v301_v12, 312  ;;  %327 = vbcast.lane.b32.xlu0 %v301_v12, 304 }
  0x92   :  { %339 = vbcast.lane.b32.xlu1 %v301_v12, 328  ;;  %335 = vbcast.lane.b32.xlu0 %v301_v12, 320 }
  0x94   :  { %v2503_v13 = vpop.permute.xlu1 %110  ;;  %v2505_v14 = vpop.permute.xlu0 %102 }
  0x96   :  { %347 = vbcast.lane.b32.xlu1 %v301_v12, 344  ;;  %343 = vbcast.lane.b32.xlu0 %v301_v12, 336 }
  0x98   :  { %v2507_v15 = vpop.permute.xlu1 %114  ;;  %v2509_v16 = vpop.permute.xlu0 %106 }
  0x9a   :  { %355 = vbcast.lane.b32.xlu1 %v301_v12, 360  ;;  %351 = vbcast.lane.b32.xlu0 %v301_v12, 352 }
  0x9c   :  { %v2512_v18 = vpop.permute.xlu1 %122  ;;  %v2514_v19 = vpop.permute.xlu0 %118 }
  0x9e   :  { %363 = vbcast.lane.b32.xlu1 %v301_v12, 376  ;;  %359 = vbcast.lane.b32.xlu0 %v301_v12, 368  ;;  %v50_v12 = vunpack.c.l.s4 %v2457_v10  ;;  %v569_v10 = vrot.slane %v2487_v5, %v3638_v35 }
  0xa0   :  { %v2519_v21 = vpop.permute.xlu1 %130  ;;  %v2521_v22 = vpop.permute.xlu0 %126  ;;  %v51_v53 = vunpack.c.0.s8 %v50_v12 }
  0xa2   :  { %374 = vbcast.lane.b32.xlu1 %v368_v20, 264  ;;  %370 = vbcast.lane.b32.xlu0 %v368_v20, 256  ;;  %v2625_v9 = vsub.s32 %v51_v53, %v2482_v1 }
  0xa4   :  { %v2523_v23 = vpop.permute.xlu1 %138  ;;  %v2525_v24 = vpop.permute.xlu0 %134  ;;  %3661 = vst [vmem:[#allocation25_spill] sm:$0xff] %v2625_v9 }
  0xa6   :  { %382 = vbcast.lane.b32.xlu1 %v368_v20, 280  ;;  %378 = vbcast.lane.b32.xlu0 %v368_v20, 272 }
  0xa8   :  { %v2527_v25 = vpop.permute.xlu1 %146  ;;  %v2529_v26 = vpop.permute.xlu0 %142 }
  0xaa   :  { %390 = vbcast.lane.b32.xlu1 %v368_v20, 296  ;;  %386 = vbcast.lane.b32.xlu0 %v368_v20, 288 }
  0xac   :  { %v2531_v27 = vpop.permute.xlu1 %154  ;;  %v2533_v28 = vpop.permute.xlu0 %150 }
  0xae   :  { %398 = vbcast.lane.b32.xlu1 %v368_v20, 312  ;;  %394 = vbcast.lane.b32.xlu0 %v368_v20, 304 }
  0xb0   :  { %v2535_v29 = vpop.permute.xlu1 %162  ;;  %v2537_v30 = vpop.permute.xlu0 %158 }
  0xb2   :  { %406 = vbcast.lane.b32.xlu1 %v368_v20, 328  ;;  %402 = vbcast.lane.b32.xlu0 %v368_v20, 320 }
  0xb4   :  { %v2539_v31 = vpop.permute.xlu1 %173  ;;  %v2541_v32 = vpop.permute.xlu0 %169 }
  0xb6   :  { %414 = vbcast.lane.b32.xlu1 %v368_v20, 344  ;;  %410 = vbcast.lane.b32.xlu0 %v368_v20, 336 }
  0xb8   :  { %v2543_v33 = vpop.permute.xlu1 %181  ;;  %v2545_v34 = vpop.permute.xlu0 %177 }
  0xba   :  { %422 = vbcast.lane.b32.xlu1 %v368_v20, 360  ;;  %418 = vbcast.lane.b32.xlu0 %v368_v20, 352 }
  0xbc   :  { %v2548_v36 = vpop.permute.xlu1 %189  ;;  %v2550_v37 = vpop.permute.xlu0 %185 }
  0xbe   :  { %430 = vbcast.lane.b32.xlu1 %v368_v20, 376  ;;  %426 = vbcast.lane.b32.xlu0 %v368_v20, 368 }
  0xc0   :  { %v2555_v39 = vpop.permute.xlu1 %197  ;;  %v2557_v40 = vpop.permute.xlu0 %193 }
  0xc2   :  { %441 = vbcast.lane.b32.xlu1 %v435_v38, 264  ;;  %437 = vbcast.lane.b32.xlu0 %v435_v38, 256 }
  0xc4   :  { %v2559_v41 = vpop.permute.xlu1 %205  ;;  %v2561_v42 = vpop.permute.xlu0 %201 }
  0xc6   :  { %449 = vbcast.lane.b32.xlu1 %v435_v38, 280  ;;  %445 = vbcast.lane.b32.xlu0 %v435_v38, 272 }
  0xc8   :  { %v2563_v43 = vpop.permute.xlu1 %213  ;;  %v2565_v44 = vpop.permute.xlu0 %209 }
  0xca   :  { %457 = vbcast.lane.b32.xlu1 %v435_v38, 296  ;;  %453 = vbcast.lane.b32.xlu0 %v435_v38, 288 }
  0xcc   :  { %v2567_v45 = vpop.permute.xlu1 %221  ;;  %v2569_v46 = vpop.permute.xlu0 %217 }
  0xce   :  { %465 = vbcast.lane.b32.xlu1 %v435_v38, 312  ;;  %461 = vbcast.lane.b32.xlu0 %v435_v38, 304 }
  0xd0   :  { %v2571_v47 = vpop.permute.xlu1 %229  ;;  %v2573_v48 = vpop.permute.xlu0 %225 }
  0xd1   :  { %3650 = vst [vmem:[#allocation14_spill] sm:$0xff] %v2573_v48 }
  0xd2   :  { %473 = vbcast.lane.b32.xlu1 %v435_v38, 328  ;;  %469 = vbcast.lane.b32.xlu0 %v435_v38, 320 }
  0xd4   :  { %v2575_v49 = vpop.permute.xlu1 %240  ;;  %v2577_v50 = vpop.permute.xlu0 %236 }
  0xd6   :  { %481 = vbcast.lane.b32.xlu1 %v435_v38, 344  ;;  %477 = vbcast.lane.b32.xlu0 %v435_v38, 336 }
  0xd8   :  { %v2579_v51 = vpop.permute.xlu1 %248  ;;  %v2581_v52 = vpop.permute.xlu0 %244 }
  0xda   :  { %489 = vbcast.lane.b32.xlu1 %v435_v38, 360  ;;  %485 = vbcast.lane.b32.xlu0 %v435_v38, 352 }
  0xdc   :  { %v2584_v54 = vpop.permute.xlu1 %256  ;;  %v2586_v55 = vpop.permute.xlu0 %252 }
  0xde   :  { %497 = vbcast.lane.b32.xlu1 %v435_v38, 376  ;;  %493 = vbcast.lane.b32.xlu0 %v435_v38, 368 }
  0xe0   :  { %v2591_v57 = vpop.permute.xlu1 %264  ;;  %v2593_v58 = vpop.permute.xlu0 %260 }
  0xe2   :  { %508 = vbcast.lane.b32.xlu1 %v502_v56, 264  ;;  %504 = vbcast.lane.b32.xlu0 %v502_v56, 256 }
  0xe4   :  { %v2595_v59 = vpop.permute.xlu1 %272  ;;  %v2597_v60 = vpop.permute.xlu0 %268 }
  0xe5   :  { %3651 = vst [vmem:[#allocation15_spill] sm:$0xff] %v2595_v59  ;;  %3652 = vst [vmem:[#allocation16_spill] sm:$0xff] %v2597_v60 }
  0xe6   :  { %516 = vbcast.lane.b32.xlu1 %v502_v56, 280  ;;  %512 = vbcast.lane.b32.xlu0 %v502_v56, 272 }
  0xe8   :  { %v2599_v61 = vpop.permute.xlu1 %280  ;;  %v2601_v62 = vpop.permute.xlu0 %276 }
  0xe9   :  { %3653 = vst [vmem:[#allocation17_spill] sm:$0xff] %v2599_v61  ;;  %3654 = vst [vmem:[#allocation18_spill] sm:$0xff] %v2601_v62 }
  0xea   :  { %524 = vbcast.lane.b32.xlu1 %v502_v56, 296  ;;  %520 = vbcast.lane.b32.xlu0 %v502_v56, 288 }
  0xec   :  { %v2603_v63 = vpop.permute.xlu1 %288  ;;  %v2605_v0 = vpop.permute.xlu0 %284 }
  0xed   :  { %3655 = vst [vmem:[#allocation19_spill] sm:$0xff] %v2603_v63  ;;  %3656 = vst [vmem:[#allocation20_spill] sm:$0xff] %v2605_v0 }
  0xee   :  { %532 = vbcast.lane.b32.xlu1 %v502_v56, 312  ;;  %528 = vbcast.lane.b32.xlu0 %v502_v56, 304 }
  0xf0   :  { %v2607_v3 = vpop.permute.xlu1 %296  ;;  %v2609_v4 = vpop.permute.xlu0 %292 }
  0xf1   :  { %3657 = vst [vmem:[#allocation21_spill] sm:$0xff] %v2607_v3  ;;  %3658 = vst [vmem:[#allocation22_spill] sm:$0xff] %v2609_v4  ;;  %v55_v3 = vrot.slane %v2487_v5, %v2625_v9 }
  0xf2   :  { %540 = vbcast.lane.b32.xlu1 %v502_v56, 328  ;;  %536 = vbcast.lane.b32.xlu0 %v502_v56, 320 }
  0xf3   :  { %v2641_v53 = vrot.slane %v55_v3, %v2625_v9 }
  0xf4   :  { %v2611_v6 = vpop.permute.xlu1 %307  ;;  %v2613_v8 = vpop.permute.xlu0 %303 }
  0xf5   :  { %v2649_v1 = vrot.slane %v2641_v53, %v2485_v2 }
  0xf6   :  { %548 = vbcast.lane.b32.xlu1 %v502_v56, 344  ;;  %544 = vbcast.lane.b32.xlu0 %v502_v56, 336 }
  0xf7   :  { %v673_v62 = vsub.f32 %v2649_v1, %v2505_v14 }
  0xf8   :  { %v2615_v20 = vpop.permute.xlu1 %315  ;;  %v2617_v38 = vpop.permute.xlu0 %311 }
  0xfa   :  { %556 = vbcast.lane.b32.xlu1 %v502_v56, 360  ;;  %552 = vbcast.lane.b32.xlu0 %v502_v56, 352 }
  0xfc   :  { %v2620_v17 = vpop.permute.xlu1 %323  ;;  %v2622_v11 = vpop.permute.xlu0 %319 }
  0xfd   :  { %3659 = vst [vmem:[#allocation23_spill] sm:$0xff] %v2620_v17  ;;  %3660 = vst [vmem:[#allocation24_spill] sm:$0xff] %v2622_v11 }
  0xfe   :  { %564 = vbcast.lane.b32.xlu1 %v502_v56, 376  ;;  %560 = vbcast.lane.b32.xlu0 %v502_v56, 368 }
 0x100   :  { %v2630_v7 = vpop.permute.xlu1 %331  ;;  %v2632_v12 = vpop.permute.xlu0 %327 }
 0x101   :  { %3662 = vst [vmem:[#allocation26_spill] sm:$0xff] %v2630_v7  ;;  %3663 = vst [vmem:[#allocation27_spill] sm:$0xff] %v2632_v12  ;;  %v63_v7 = vcombine.high %v55_v3, %v55_v3 }
 0x102   :  { %575 = vbcast.lane.b32.xlu1 %v569_v10, 264  ;;  %571 = vbcast.lane.b32.xlu0 %v569_v10, 256 }
 0x103   :  { %v2664_v61 = vrot.slane %v63_v7, %v2625_v9  ;;  %v676_v7 = vsub.f32 %v2649_v1, %v2507_v15 }
 0x104   :  { %v2636_v4 = vpop.permute.xlu1 %339  ;;  %v2638_v63 = vpop.permute.xlu0 %335 }
 0x105   :  { %3664 = vst [vmem:[#allocation28_spill] sm:$0xff] %v2636_v4  ;;  %3665 = vst [vmem:[#allocation29_spill] sm:$0xff] %v2638_v63  ;;  %v674_v4 = vsub.f32 %v2649_v1, %v2509_v16  ;;  %v675_v16 = vsub.f32 %v2649_v1, %v2503_v13  ;;  %v804_v17 = vand.u32 2147483647, %v676_v7 }
 0x106   :  { %579 = vbcast.lane.b32.xlu0 %v569_v10, 272  ;;  %583 = vbcast.lane.b32.xlu1 %v569_v10, 280 }
 0x108   :  { %v2643_v56 = vpop.permute.xlu1 %347  ;;  %v2645_v35 = vpop.permute.xlu0 %343 }
 0x109   :  { %3666 = vst [vmem:[#allocation30_spill] sm:$0xff] %v2643_v56  ;;  %3667 = vst [vmem:[#allocation31_spill] sm:$0xff] %v2645_v35  ;;  %v802_v56 = vand.u32 2147483647, %v674_v4  ;;  %v2674_v4 = vrot.slane %v2664_v61, %v2485_v2 }
 0x10a   :  { %587 = vbcast.lane.b32.xlu0 %v569_v10, 288  ;;  %591 = vbcast.lane.b32.xlu1 %v569_v10, 296 }
 0x10b   :  { %v691_v15 = vsub.f32 %v2674_v4, %v2545_v34 }
 0x10c   :  { %v2653_v0 = vpop.permute.xlu1 %355  ;;  %v2655_v63 = vpop.permute.xlu0 %351 }
 0x10d   :  { %3668 = vst [vmem:[#allocation32_spill] sm:$0xff] %v2653_v0  ;;  %3669 = vst [vmem:[#allocation33_spill] sm:$0xff] %v2655_v63  ;;  %v801_v0 = vand.u32 2147483647, %v673_v62  ;;  %v819_v7 = vand.u32 2147483647, %v691_v15  ;;  %v680_v15 = vsub.f32 %v2649_v1, %v2519_v21  ;;  %v695_v21 = vsub.f32 %v2674_v4, %v2557_v40 }
 0x10e   :  { %595 = vbcast.lane.b32.xlu0 %v569_v10, 304  ;;  %599 = vbcast.lane.b32.xlu1 %v569_v10, 312 }
 0x10f   :  { %v929_v3 = vadd.f32 %v802_v56, %v801_v0  ;;  %v690_v0 = vsub.f32 %v2674_v4, %v2539_v31  ;;  %v689_v56 = vsub.f32 %v2674_v4, %v2541_v32  ;;  %v678_v31 = vsub.f32 %v2649_v1, %v2512_v18 }
 0x110   :  { %v2659_v35 = vpop.permute.xlu1 %363  ;;  %v2661_v12 = vpop.permute.xlu0 %359  ;;  %v693_v18 = vsub.f32 %v2674_v4, %v2550_v37  ;;  %v808_v37 = vand.u32 2147483647, %v680_v15 }
 0x111   :  { %3670 = vst [vmem:[#allocation34_spill] sm:$0xff] %v2659_v35  ;;  %3671 = vst [vmem:[#allocation35_spill] sm:$0xff] %v2661_v12  ;;  %v803_v35 = vand.u32 2147483647, %v675_v16  ;;  %v677_v16 = vsub.f32 %v2649_v1, %v2514_v19  ;;  %v818_v48 = vand.u32 2147483647, %v690_v0  ;;  %v692_v19 = vsub.f32 %v2674_v4, %v2543_v33 }
 0x112   :  { %603 = vbcast.lane.b32.xlu0 %v569_v10, 320  ;;  %607 = vbcast.lane.b32.xlu1 %v569_v10, 328  ;;  %v679_v0 = vsub.f32 %v2649_v1, %v2521_v22 }
 0x113   :  { %v930_v12 = vadd.f32 %v929_v3, %v803_v35  ;;  %v805_v32 = vand.u32 2147483647, %v677_v16 }
 0x114   :  { %v2668_v63 = vpop.permute.xlu1 %374  ;;  %v2670_v14 = vpop.permute.xlu0 %370 }
 0x115   :  { %v931_v35 = vadd.f32 %v930_v12, %v804_v17  ;;  %v806_v12 = vand.u32 2147483647, %v678_v31 }
 0x116   :  { %611 = vbcast.lane.b32.xlu0 %v569_v10, 336  ;;  %615 = vbcast.lane.b32.xlu1 %v569_v10, 344 }
 0x117   :  { %v932_v60 = vadd.f32 %v931_v35, %v805_v32  ;;  %v807_v35 = vand.u32 2147483647, %v679_v0 }
 0x118   :  { %v2678_v13 = vpop.permute.xlu1 %382  ;;  %v2680_v62 = vpop.permute.xlu0 %378 }
 0x119   :  { %3672 = vst [vmem:[#allocation36_spill] sm:$0xff] %v2678_v13  ;;  %v817_v13 = vand.u32 2147483647, %v689_v56  ;;  %v820_v56 = vand.u32 2147483647, %v692_v19 }
 0x11a   :  { %619 = vbcast.lane.b32.xlu0 %v569_v10, 352  ;;  %623 = vbcast.lane.b32.xlu1 %v569_v10, 360 }
 0x11b   :  { %v950_v34 = vadd.f32 %v818_v48, %v817_v13  ;;  %v694_v48 = vsub.f32 %v2674_v4, %v2548_v36  ;;  %v821_v13 = vand.u32 2147483647, %v693_v18  ;;  %v93_v36 = vcombine.high %v2641_v53, %v2641_v53 }
 0x11c   :  { %v2690_v3 = vpop.permute.xlu1 %390  ;;  %v2692_v59 = vpop.permute.xlu0 %386 }
 0x11d   :  { %3673 = vst [vmem:[#allocation37_spill] sm:$0xff] %v2690_v3  ;;  %v951_v3 = vadd.f32 %v950_v34, %v819_v7  ;;  %v822_v7 = vand.u32 2147483647, %v694_v48  ;;  %v2733_v40 = vrot.slane %v93_v36, %v2485_v2 }
 0x11e   :  { %627 = vbcast.lane.b32.xlu0 %v569_v10, 368  ;;  %631 = vbcast.lane.b32.xlu1 %v569_v10, 376  ;;  %v933_v10 = vadd.f32 %v932_v60, %v806_v12  ;;  %v681_v60 = vsub.f32 %v2649_v1, %v2525_v24  ;;  %v696_v24 = vsub.f32 %v2674_v4, %v2555_v39 }
 0x11f   :  { %v952_v31 = vadd.f32 %v951_v3, %v820_v56  ;;  %v682_v56 = vsub.f32 %v2649_v1, %v2523_v23  ;;  %v707_v36 = vsub.f32 %v2733_v40, %v2581_v52  ;;  %v685_v52 = vsub.f32 %v2649_v1, %v2533_v28 }
 0x120   :  { %v2698_v11 = vpop.permute.xlu1 %398  ;;  %v2700_v17 = vpop.permute.xlu0 %394  ;;  %v934_v22 = vadd.f32 %v933_v10, %v807_v35  ;;  %v809_v18 = vand.u32 2147483647, %v681_v60  ;;  %v823_v10 = vand.u32 2147483647, %v695_v21  ;;  %v706_v60 = vsub.f32 %v2733_v40, %v2575_v49 }
 0x121   :  { %v953_v34 = vadd.f32 %v952_v31, %v821_v13  ;;  %v810_v13 = vand.u32 2147483647, %v682_v56  ;;  %v683_v31 = vsub.f32 %v2649_v1, %v2529_v26  ;;  %v48_v49 = vcombine.high %v2487_v5, %v2487_v5 }
 0x122   :  { %v935_v12 = vadd.f32 %v934_v22, %v808_v37  ;;  %v824_v22 = vand.u32 2147483647, %v696_v24  ;;  %v697_v37 = vsub.f32 %v2674_v4, %v2561_v42  ;;  %v698_v42 = vsub.f32 %v2674_v4, %v2559_v41 }
 0x123   :  { %v954_v15 = vadd.f32 %v953_v34, %v822_v7  ;;  %v705_v7 = vsub.f32 %v2733_v40, %v2577_v50  ;;  %v811_v26 = vand.u32 2147483647, %v683_v31  ;;  %v834_v24 = vand.u32 2147483647, %v706_v60 }
 0x124   :  { %v2706_v16 = vpop.permute.xlu1 %406  ;;  %v2708_v33 = vpop.permute.xlu0 %402  ;;  %v936_v35 = vadd.f32 %v935_v12, %v809_v18  ;;  %v684_v12 = vsub.f32 %v2649_v1, %v2527_v25  ;;  %v825_v56 = vand.u32 2147483647, %v697_v37  ;;  %v95_v25 = vcombine.high %v2664_v61, %v2664_v61 }
 0x125   :  { %v955_v23 = vadd.f32 %v954_v15, %v823_v10  ;;  %v833_v10 = vand.u32 2147483647, %v705_v7  ;;  %v708_v41 = vsub.f32 %v2733_v40, %v2579_v51  ;;  %v835_v31 = vand.u32 2147483647, %v707_v36 }
 0x126   :  { %v937_v39 = vadd.f32 %v936_v35, %v810_v13  ;;  %v812_v13 = vand.u32 2147483647, %v684_v12  ;;  %v699_v37 = vsub.f32 %v2674_v4, %v2565_v44  ;;  %v686_v28 = vsub.f32 %v2649_v1, %v2531_v27 }
 0x127   :  { %v956_v18 = vadd.f32 %v955_v23, %v824_v22  ;;  %v826_v22 = vand.u32 2147483647, %v698_v42  ;;  %v971_v7 = vadd.f32 %v834_v24, %v833_v10  ;;  %v2779_v12 = vrot.slane %v95_v25, %v2485_v2 }
 0x128   :  { %v2714_v32 = vpop.permute.xlu1 %414  ;;  %v2716_v19 = vpop.permute.xlu0 %410  ;;  %v938_v50 = vadd.f32 %v937_v39, %v811_v26  ;;  %v62_v39 = vrot.slane %v48_v49, %v2625_v9  ;;  %v813_v36 = vand.u32 2147483647, %v685_v52  ;;  %v836_v42 = vand.u32 2147483647, %v708_v41 }
 0x129   :  { %v957_v23 = vadd.f32 %v956_v18, %v825_v56  ;;  %v972_v56 = vadd.f32 %v971_v7, %v835_v31  ;;  %v709_v44 = vsub.f32 %v2733_v40, %v2586_v55  ;;  %v700_v18 = vsub.f32 %v2674_v4, %v2563_v43 }
 0x12a   :  { %v939_v60 = vadd.f32 %v938_v50, %v812_v13  ;;  %v64_v51 = vcombine.high %v62_v39, %v62_v39  ;;  %v827_v49 = vand.u32 2147483647, %v699_v37  ;;  %v2786_v10 = vrot.slane %v62_v39, %v2625_v9 }
 0x12b   :  { %v958_v50 = vadd.f32 %v957_v23, %v826_v22  ;;  %v814_v13 = vand.u32 2147483647, %v686_v28  ;;  %v687_v52 = vsub.f32 %v2649_v1, %v2537_v30  ;;  %v710_v55 = vsub.f32 %v2733_v40, %v2584_v54 }
 0x12c   :  { %v2724_v0 = vpop.permute.xlu1 %422  ;;  %v2726_v3 = vpop.permute.xlu0 %418  ;;  %v940_v24 = vadd.f32 %v939_v60, %v813_v36  ;;  %v2797_v41 = vrot.slane %v64_v51, %v2625_v9  ;;  %v837_v43 = vand.u32 2147483647, %v709_v44  ;;  %v973_v31 = vadd.f32 %v972_v56, %v836_v42 }
 0x12d   :  { %v722_v22 = vsub.f32 %v2779_v12, %v2611_v6  ;;  %v721_v23 = vsub.f32 %v2779_v12, %v2613_v8  ;;  %v688_v37 = vsub.f32 %v2649_v1, %v2535_v29  ;;  %v828_v39 = vand.u32 2147483647, %v700_v18 }
 0x12e   :  { %v959_v60 = vadd.f32 %v958_v50, %v827_v49  ;;  %v701_v30 = vsub.f32 %v2674_v4, %v2569_v46  ;;  %v941_v54 = vadd.f32 %v940_v24, %v814_v13  ;;  %v723_v7 = vsub.f32 %v2779_v12, %v2617_v38 }
 0x12f   :  { %v2811_v28 = vrot.slane %v2786_v10, %v2485_v2  ;;  %v815_v8 = vand.u32 2147483647, %v687_v52  ;;  %v702_v1 = vsub.f32 %v2674_v4, %v2567_v45  ;;  %v838_v29 = vand.u32 2147483647, %v710_v55 }
 0x130   :  { %v2735_v48 = vpop.permute.xlu1 %430  ;;  %v2737_v53 = vpop.permute.xlu0 %426  ;;  %v2821_v46 = vrot.slane %v2797_v41, %v2485_v2  ;;  %v974_v36 = vadd.f32 %v973_v31, %v837_v43  ;;  %v711_v38 = vsub.f32 %v2733_v40, %v2593_v58  ;;  %v850_v42 = vand.u32 2147483647, %v722_v22 }
 0x131   :  { %v849_v56 = vand.u32 2147483647, %v721_v23  ;;  %v2825_v44 = vand.u32 2147483647, %v688_v37  ;;  %v829_v18 = vand.u32 2147483647, %v701_v30  ;;  %v960_v49 = vadd.f32 %v959_v60, %v828_v39 }
 0x132   :  { %v724_v50 = vsub.f32 %v2779_v12, %v2615_v20  ;;  %v2829_v24 = vadd.f32 %v941_v54, %v815_v8  ;;  %v851_v45 = vand.u32 2147483647, %v723_v7  ;;  %v738_v13 = vsub.f32 %v2811_v28, %v2668_v63 }
 0x133   :  { %3674 = vst [vmem:[#allocation38_spill] sm:$0xff] %v2825_v44  ;;  %v737_v52 = vsub.f32 %v2811_v28, %v2670_v14  ;;  %v2839_v43 = vand.u32 2147483647, %v702_v1  ;;  %v712_v31 = vsub.f32 %v2733_v40, %v2591_v57  ;;  %v839_v23 = vand.u32 2147483647, %v711_v38 }
 0x134   :  { %v2747_v34 = vpop.permute.xlu1 %441  ;;  %v2749_v21 = vpop.permute.xlu0 %437  ;;  %3675 = vst [vmem:[#allocation39_spill] sm:$0xff] %v2829_v24  ;;  %v975_v63 = vadd.f32 %v974_v36, %v838_v29  ;;  %v992_v37 = vadd.f32 %v850_v42, %v849_v56  ;;  %v739_v14 = vsub.f32 %v2811_v28, %v2680_v62  ;;  %v2849_v39 = vadd.f32 %v960_v49, %v829_v18  ;;  %v3677_v62 = vld [vmem:[#allocation16_spill] sm:$0xff] }
 0x135   :  { %v754_v20 = vsub.f32 %v2821_v46, %v2747_v34  ;;  %v753_v22 = vsub.f32 %v2821_v46, %v2749_v21  ;;  %v704_v60 = vsub.f32 %v2674_v4, %v2571_v47  ;;  %v852_v30 = vand.u32 2147483647, %v724_v50  ;;  %v3676_v34 = vld [vmem:[#allocation24_spill] sm:$0xff] }
 0x136   :  { %v993_v54 = vadd.f32 %v992_v37, %v851_v45  ;;  %v725_v7 = vsub.f32 %v2779_v12, %v3676_v34  ;;  %v866_v21 = vand.u32 2147483647, %v738_v13  ;;  %v865_v8 = vand.u32 2147483647, %v737_v52  ;;  %v3678_v18 = vld [vmem:[#allocation36_spill] sm:$0xff]  ;;  %v3679_v45 = vld [vmem:[#allocation14_spill] sm:$0xff] }
 0x137   :  { %v713_v36 = vsub.f32 %v2733_v40, %v3677_v62  ;;  %v882_v38 = vand.u32 2147483647, %v754_v20  ;;  %v881_v42 = vand.u32 2147483647, %v753_v22  ;;  %v94_v47 = vcombine.high %v2786_v10, %v2786_v10  ;;  %v3680_v52 = vld [vmem:[#allocation15_spill] sm:$0xff] }
 0x138   :  { %v2759_v15 = vpop.permute.xlu1 %449  ;;  %v2761_v35 = vpop.permute.xlu0 %445  ;;  %v840_v56 = vand.u32 2147483647, %v712_v31  ;;  %v740_v49 = vsub.f32 %v2811_v28, %v3678_v18  ;;  %v867_v50 = vand.u32 2147483647, %v739_v14  ;;  %v714_v37 = vsub.f32 %v2733_v40, %v3680_v52  ;;  %v3681_v22 = vld [vmem:[#allocation23_spill] sm:$0xff] }
 0x139   :  { %v755_v57 = vsub.f32 %v2821_v46, %v2761_v35  ;;  %v976_v35 = vadd.f32 %v975_v63, %v839_v23  ;;  %v756_v34 = vsub.f32 %v2821_v46, %v2759_v15  ;;  %v726_v62 = vsub.f32 %v2779_v12, %v3681_v22 }
 0x13a   :  { %v853_v10 = vand.u32 2147483647, %v725_v7  ;;  %v994_v31 = vadd.f32 %v993_v54, %v852_v30  ;;  %v1013_v23 = vadd.f32 %v866_v21, %v865_v8  ;;  %v2879_v14 = vand.u32 2147483647, %v704_v60  ;;  %v3684_v8 = vld [vmem:[#allocation17_spill] sm:$0xff] }
 0x13b   :  { %v883_v20 = vand.u32 2147483647, %v755_v57  ;;  %v841_v13 = vand.u32 2147483647, %v713_v36  ;;  %v1034_v9 = vadd.f32 %v882_v38, %v881_v42  ;;  %v2882_v52 = vrot.slane %v94_v47, %v2485_v2  ;;  %v3685_v42 = vld [vmem:[#allocation27_spill] sm:$0xff] }
 0x13c   :  { %v2772_v26 = vpop.permute.xlu1 %457  ;;  %v2774_v61 = vpop.permute.xlu0 %453  ;;  %3683 = vst [vmem:[#allocation16_spill] sm:$0xff] %v2879_v14  ;;  %v977_v5 = vadd.f32 %v976_v35, %v840_v56  ;;  %v868_v15 = vand.u32 2147483647, %v740_v49  ;;  %v1014_v57 = vadd.f32 %v1013_v23, %v867_v50  ;;  %v741_v22 = vsub.f32 %v2811_v28, %v2692_v59  ;;  %v3686_v49 = vld [vmem:[#allocation18_spill] sm:$0xff]  ;;  %v3687_v59 = vld [vmem:[#allocation37_spill] sm:$0xff] }
 0x13d   :  { %v842_v7 = vand.u32 2147483647, %v714_v37  ;;  %v884_v30 = vand.u32 2147483647, %v756_v34  ;;  %v1035_v54 = vadd.f32 %v1034_v9, %v883_v20  ;;  %v757_v21 = vsub.f32 %v2821_v46, %v2774_v61 }
 0x13e   :  { %v716_v60 = vsub.f32 %v2733_v40, %v3684_v8  ;;  %v854_v36 = vand.u32 2147483647, %v726_v62  ;;  %v995_v38 = vadd.f32 %v994_v31, %v853_v10  ;;  %v727_v47 = vsub.f32 %v2779_v12, %v3685_v42 }
 0x13f   :  { %v715_v50 = vsub.f32 %v2733_v40, %v3686_v49  ;;  %v742_v37 = vsub.f32 %v2811_v28, %v3687_v59  ;;  %v978_v34 = vadd.f32 %v977_v5, %v841_v13  ;;  %v869_v20 = vand.u32 2147483647, %v741_v22  ;;  %v3688_v49 = vld [vmem:[#allocation26_spill] sm:$0xff] }
 0x140   :  { %v2788_v27 = vpop.permute.xlu1 %465  ;;  %v2790_v25 = vpop.permute.xlu0 %461  ;;  %v1015_v23 = vadd.f32 %v1014_v57, %v868_v15  ;;  %v758_v62 = vsub.f32 %v2821_v46, %v2772_v26  ;;  %v885_v10 = vand.u32 2147483647, %v757_v21  ;;  %v1036_v31 = vadd.f32 %v1035_v54, %v884_v30 }
 0x141   :  { %v2900_v24 = vand.u32 2147483647, %v716_v60  ;;  %v728_v44 = vsub.f32 %v2779_v12, %v3688_v49  ;;  %v855_v59 = vand.u32 2147483647, %v727_v47  ;;  %v996_v14 = vadd.f32 %v995_v38, %v854_v36  ;;  %v3690_v49 = vld [vmem:[#allocation20_spill] sm:$0xff] }
 0x142   :  { %v870_v5 = vand.u32 2147483647, %v742_v37  ;;  %v1016_v26 = vadd.f32 %v1015_v23, %v869_v20  ;;  %v743_v57 = vsub.f32 %v2811_v28, %v2700_v17  ;;  %v886_v22 = vand.u32 2147483647, %v758_v62  ;;  %v3689_v37 = vld [vmem:[#allocation29_spill] sm:$0xff] }
 0x143   :  { %v759_v30 = vsub.f32 %v2821_v46, %v2790_v25  ;;  %v1037_v54 = vadd.f32 %v1036_v31, %v885_v10  ;;  %v979_v38 = vadd.f32 %v978_v34, %v842_v7  ;;  %v856_v47 = vand.u32 2147483647, %v728_v44 }
 0x144   :  { %v2813_v6 = vpop.permute.xlu1 %473  ;;  %v2815_v51 = vpop.permute.xlu0 %469  ;;  %v744_v20 = vsub.f32 %v2811_v28, %v2698_v11  ;;  %v871_v62 = vand.u32 2147483647, %v743_v57  ;;  %v1017_v10 = vadd.f32 %v1016_v26, %v870_v5  ;;  %v760_v7 = vsub.f32 %v2821_v46, %v2788_v27  ;;  %v3691_v11 = vld [vmem:[#allocation28_spill] sm:$0xff] }
 0x145   :  { %v887_v44 = vand.u32 2147483647, %v759_v30 }
 0x146   :  { %v1018_v30 = vadd.f32 %v1017_v10, %v871_v62 }
 0x148   :  { %v2835_v55 = vpop.permute.xlu1 %481  ;;  %v2837_v58 = vpop.permute.xlu0 %477 }
 0x14c   :  { %v2857_v1 = vpop.permute.xlu1 %489  ;;  %v2859_v29 = vpop.permute.xlu0 %485 }
 0x150   :  { %v2875_v63 = vpop.permute.xlu1 %497  ;;  %v2877_v18 = vpop.permute.xlu0 %493 }
 0x151   :  { %3682 = vst [vmem:[#allocation24_spill] sm:$0xff] %v2875_v63 }
 0x154   :  { %v509_v56 = vpop.permute.xlu1 %508  ;;  %v505_v35 = vpop.permute.xlu0 %504 }
 0x155   :  { %v770_v9 = vsub.f32 %v2882_v52, %v509_v56  ;;  %v769_v61 = vsub.f32 %v2882_v52, %v505_v35  ;;  %v843_v35 = vand.u32 2147483647, %v715_v50  ;;  %v997_v50 = vadd.f32 %v996_v14, %v855_v59 }
 0x156   :  { %v1038_v14 = vadd.f32 %v1037_v54, %v886_v22  ;;  %v717_v59 = vsub.f32 %v2733_v40, %v3690_v49  ;;  %v872_v22 = vand.u32 2147483647, %v744_v20  ;;  %v888_v54 = vand.u32 2147483647, %v760_v7 }
 0x157   :  { %v898_v8 = vand.u32 2147483647, %v770_v9  ;;  %v897_v42 = vand.u32 2147483647, %v769_v61  ;;  %v729_v9 = vsub.f32 %v2779_v12, %v3689_v37  ;;  %v998_v57 = vadd.f32 %v997_v50, %v856_v47 }
 0x158   :  { %v517_v56 = vpop.permute.xlu1 %516  ;;  %v513_v63 = vpop.permute.xlu0 %512  ;;  %v3692_v47 = vsub.f32 %v2674_v4, %v3679_v45  ;;  %v1019_v45 = vadd.f32 %v1018_v30, %v872_v22  ;;  %v962_v49 = vadd.f32 %v2849_v39, %v2839_v43  ;;  %v747_v43 = vsub.f32 %v2811_v28, %v2716_v19 }
 0x159   :  { %v772_v13 = vsub.f32 %v2882_v52, %v517_v56  ;;  %v771_v15 = vsub.f32 %v2882_v52, %v513_v63  ;;  %v1055_v21 = vadd.f32 %v898_v8, %v897_v42  ;;  %v980_v42 = vadd.f32 %v979_v38, %v843_v35 }
 0x15a   :  { %v730_v56 = vsub.f32 %v2779_v12, %v3691_v11  ;;  %v745_v35 = vsub.f32 %v2811_v28, %v2708_v33  ;;  %v831_v50 = vand.u32 2147483647, %v3692_v47  ;;  %v3694_v33 = vld [vmem:[#allocation31_spill] sm:$0xff] }
 0x15b   :  { %v900_v60 = vand.u32 2147483647, %v772_v13  ;;  %v899_v36 = vand.u32 2147483647, %v771_v15  ;;  %v857_v13 = vand.u32 2147483647, %v729_v9  ;;  %v731_v62 = vsub.f32 %v2779_v12, %v3694_v33 }
 0x15c   :  { %v525_v61 = vpop.permute.xlu1 %524  ;;  %v521_v63 = vpop.permute.xlu0 %520  ;;  %v3693_v9 = vld [vmem:[#allocation19_spill] sm:$0xff]  ;;  %v873_v4 = vand.u32 2147483647, %v745_v35  ;;  %v763_v35 = vsub.f32 %v2821_v46, %v2837_v58  ;;  %v748_v58 = vsub.f32 %v2811_v28, %v2714_v32  ;;  %v2972_v32 = vadd.f32 %v962_v49, %v831_v50 }
 0x15d   :  { %v1056_v17 = vadd.f32 %v1055_v21, %v899_v36  ;;  %v774_v23 = vsub.f32 %v2882_v52, %v525_v61  ;;  %v773_v25 = vsub.f32 %v2882_v52, %v521_v63  ;;  %v761_v36 = vsub.f32 %v2821_v46, %v2815_v51 }
 0x15e   :  { %v718_v61 = vsub.f32 %v2733_v40, %v3693_v9  ;;  %v845_v63 = vand.u32 2147483647, %v717_v59  ;;  %v999_v7 = vadd.f32 %v998_v57, %v857_v13  ;;  %v765_v50 = vsub.f32 %v2821_v46, %v2859_v29 }
 0x15f   :  { %v902_v34 = vand.u32 2147483647, %v774_v23  ;;  %v901_v31 = vand.u32 2147483647, %v773_v25  ;;  %v1057_v8 = vadd.f32 %v1056_v17, %v900_v60  ;;  %v1039_v60 = vadd.f32 %v1038_v14, %v887_v44 }
 0x160   :  { %v533_v15 = vpop.permute.xlu1 %532  ;;  %v529_v21 = vpop.permute.xlu0 %528  ;;  %v858_v25 = vand.u32 2147483647, %v730_v56  ;;  %v746_v44 = vsub.f32 %v2811_v28, %v2706_v16  ;;  %v981_v14 = vadd.f32 %v980_v42, %v2900_v24  ;;  %v3695_v16 = vld [vmem:[#allocation22_spill] sm:$0xff]  ;;  %v859_v42 = vand.u32 2147483647, %v731_v62 }
 0x161   :  { %v1058_v5 = vadd.f32 %v1057_v8, %v901_v31  ;;  %v776_v26 = vsub.f32 %v2882_v52, %v533_v15  ;;  %v775_v27 = vsub.f32 %v2882_v52, %v529_v21  ;;  %v889_v31 = vand.u32 2147483647, %v761_v36 }
 0x162   :  { %v1040_v8 = vadd.f32 %v1039_v60, %v888_v54  ;;  %v846_v21 = vand.u32 2147483647, %v718_v61  ;;  %v719_v57 = vsub.f32 %v2733_v40, %v3695_v16  ;;  %v982_v39 = vadd.f32 %v981_v14, %v845_v63  ;;  %v3697_v54 = vld [vmem:[#allocation21_spill] sm:$0xff] }
 0x163   :  { %v903_v38 = vand.u32 2147483647, %v775_v27  ;;  %v1059_v37 = vadd.f32 %v1058_v5, %v902_v34  ;;  %v904_v20 = vand.u32 2147483647, %v776_v26  ;;  %v762_v34 = vsub.f32 %v2821_v46, %v2813_v6  ;;  %v3696_v5 = vld [vmem:[#allocation30_spill] sm:$0xff] }
 0x164   :  { %v541_v17 = vpop.permute.xlu1 %540  ;;  %v537_v23 = vpop.permute.xlu0 %536  ;;  %v732_v24 = vsub.f32 %v2779_v12, %v3696_v5  ;;  %v1000_v6 = vadd.f32 %v999_v7, %v858_v25  ;;  %v874_v26 = vand.u32 2147483647, %v746_v44  ;;  %v1020_v27 = vadd.f32 %v1019_v45, %v873_v4  ;;  %v3699_v7 = vld [vmem:[#allocation32_spill] sm:$0xff] }
 0x165   :  { %v1060_v10 = vadd.f32 %v1059_v37, %v903_v38  ;;  %v777_v51 = vsub.f32 %v2882_v52, %v537_v23  ;;  %v778_v59 = vsub.f32 %v2882_v52, %v541_v17  ;;  %v890_v22 = vand.u32 2147483647, %v762_v34  ;;  %v3698_v17 = vld [vmem:[#allocation33_spill] sm:$0xff] }
 0x166   :  { %v1041_v30 = vadd.f32 %v1040_v8, %v889_v31  ;;  %v720_v60 = vsub.f32 %v2733_v40, %v3697_v54  ;;  %v847_v61 = vand.u32 2147483647, %v719_v57  ;;  %v733_v19 = vsub.f32 %v2779_v12, %v3698_v17 }
 0x167   :  { %v905_v11 = vand.u32 2147483647, %v777_v51  ;;  %v1061_v56 = vadd.f32 %v1060_v10, %v904_v20  ;;  %v906_v36 = vand.u32 2147483647, %v778_v59  ;;  %v860_v20 = vand.u32 2147483647, %v732_v24 }
 0x168   :  { %v549_v13 = vpop.permute.xlu1 %548  ;;  %v545_v15 = vpop.permute.xlu0 %544  ;;  %v96_v63 = vcombine.high %v2797_v41, %v2797_v41  ;;  %v1001_v23 = vadd.f32 %v1000_v6, %v859_v42  ;;  %v875_v40 = vand.u32 2147483647, %v747_v43  ;;  %v1021_v25 = vadd.f32 %v1020_v27, %v874_v26  ;;  %v3700_v26 = vld [vmem:[#allocation35_spill] sm:$0xff] }
 0x169   :  { %v1062_v38 = vadd.f32 %v1061_v56, %v905_v11  ;;  %v779_v37 = vsub.f32 %v2882_v52, %v545_v15  ;;  %v983_v33 = vadd.f32 %v982_v39, %v846_v21  ;;  %v764_v62 = vsub.f32 %v2821_v46, %v2835_v55 }
 0x16a   :  { %v891_v10 = vand.u32 2147483647, %v763_v35  ;;  %v1042_v51 = vadd.f32 %v1041_v30, %v890_v22  ;;  %v734_v44 = vsub.f32 %v2779_v12, %v3699_v7  ;;  %v780_v4 = vsub.f32 %v2882_v52, %v549_v13 }
 0x16b   :  { %v907_v45 = vand.u32 2147483647, %v779_v37  ;;  %v1063_v14 = vadd.f32 %v1062_v38, %v906_v36  ;;  %v2974_v31 = vand.u32 2147483647, %v720_v60  ;;  %v861_v8 = vand.u32 2147483647, %v733_v19 }
 0x16c   :  { %v2955_v47 = vpop.permute.xlu1 %556  ;;  %v553_v9 = vpop.permute.xlu0 %552  ;;  %v2977_v55 = vrot.slane %v96_v63, %v2485_v2  ;;  %v1002_v59 = vadd.f32 %v1001_v23, %v860_v20  ;;  %v876_v11 = vand.u32 2147483647, %v748_v58  ;;  %v1022_v56 = vadd.f32 %v1021_v25, %v875_v40  ;;  %v3701_v37 = vld [vmem:[#allocation34_spill] sm:$0xff] }
 0x16d   :  { %v749_v13 = vsub.f32 %v2811_v28, %v2726_v3  ;;  %v2981_v15 = vadd.f32 %v983_v33, %v847_v61  ;;  %v892_v21 = vand.u32 2147483647, %v764_v62  ;;  %v1043_v16 = vadd.f32 %v1042_v51, %v891_v10 }
 0x16e   :  { %v862_v49 = vand.u32 2147483647, %v734_v44  ;;  %v908_v57 = vand.u32 2147483647, %v780_v4  ;;  %v1064_v5 = vadd.f32 %v1063_v14, %v907_v45  ;;  %v781_v24 = vsub.f32 %v2882_v52, %v553_v9 }
 0x16f   :  { %v735_v27 = vsub.f32 %v2779_v12, %v3700_v26  ;;  %v750_v3 = vsub.f32 %v2811_v28, %v2724_v0  ;;  %v1003_v22 = vadd.f32 %v1002_v59, %v861_v8  ;;  %v877_v30 = vand.u32 2147483647, %v749_v13 }
 0x170   :  { %v2968_v41 = vpop.permute.xlu1 %564  ;;  %v2970_v34 = vpop.permute.xlu0 %560  ;;  %v1023_v29 = vadd.f32 %v1022_v56, %v876_v11  ;;  %v766_v35 = vsub.f32 %v2821_v46, %v2857_v1  ;;  %v893_v54 = vand.u32 2147483647, %v765_v50  ;;  %v1044_v60 = vadd.f32 %v1043_v16, %v892_v21  ;;  %v3702_v21 = vld [vmem:[#allocation24_spill] sm:$0xff] }
 0x171   :  { %v736_v9 = vsub.f32 %v2779_v12, %v3701_v37  ;;  %v782_v0 = vsub.f32 %v2882_v52, %v2955_v47  ;;  %v909_v61 = vand.u32 2147483647, %v781_v24  ;;  %v1065_v20 = vadd.f32 %v1064_v5, %v908_v57 }
 0x172   :  { %v863_v63 = vand.u32 2147483647, %v735_v27  ;;  %v878_v23 = vand.u32 2147483647, %v750_v3  ;;  %v1024_v40 = vadd.f32 %v1023_v29, %v877_v30  ;;  %v751_v25 = vsub.f32 %v2811_v28, %v2737_v53 }
 0x173   :  { %v894_v33 = vand.u32 2147483647, %v766_v35  ;;  %v767_v12 = vsub.f32 %v2821_v46, %v2877_v18  ;;  %v1045_v62 = vadd.f32 %v1044_v60, %v893_v54  ;;  %v1004_v7 = vadd.f32 %v1003_v22, %v862_v49 }
 0x174   :  { %v576_v42 = vpop.permute.xlu1 %575  ;;  %v572_v6 = vpop.permute.xlu0 %571  ;;  %v910_v44 = vand.u32 2147483647, %v782_v0  ;;  %v1066_v4 = vadd.f32 %v1065_v20, %v909_v61  ;;  %v783_v45 = vsub.f32 %v2882_v52, %v2970_v34  ;;  %v752_v59 = vsub.f32 %v2811_v28, %v2735_v48 }
 0x175   :  { %v786_v43 = vsub.f32 %v2977_v55, %v576_v42  ;;  %v785_v39 = vsub.f32 %v2977_v55, %v572_v6  ;;  %v879_v56 = vand.u32 2147483647, %v751_v25  ;;  %v1025_v13 = vadd.f32 %v1024_v40, %v878_v23 }
 0x176   :  { %v768_v16 = vsub.f32 %v2821_v46, %v3702_v21  ;;  %v895_v50 = vand.u32 2147483647, %v767_v12  ;;  %v1046_v49 = vadd.f32 %v1045_v62, %v894_v33  ;;  %v864_v24 = vand.u32 2147483647, %v736_v9  ;;  %v3703_v46 = vld [vmem:[#allocation16_spill] sm:$0xff] }
 0x177   :  { %v914_v36 = vand.u32 2147483647, %v786_v43  ;;  %v913_v38 = vand.u32 2147483647, %v785_v39  ;;  %v784_v42 = vsub.f32 %v2882_v52, %v2968_v41  ;;  %v911_v48 = vand.u32 2147483647, %v783_v45 }
 0x178   :  { %v580_v17 = vpop.permute.xlu0 %579  ;;  %v584_v19 = vpop.permute.xlu1 %583  ;;  %v1067_v28 = vadd.f32 %v1066_v4, %v910_v44  ;;  %v1005_v27 = vadd.f32 %v1004_v7, %v863_v63  ;;  %v964_v22 = vadd.f32 %v2972_v32, %v3703_v46  ;;  %v880_v30 = vand.u32 2147483647, %v752_v59  ;;  %v3704_v41 = vld [vmem:[#allocation38_spill] sm:$0xff] }
 0x179   :  { %v787_v58 = vsub.f32 %v2977_v55, %v580_v17  ;;  %v788_v1 = vsub.f32 %v2977_v55, %v584_v19  ;;  %v1076_v47 = vadd.f32 %v914_v36, %v913_v38  ;;  %v1026_v29 = vadd.f32 %v1025_v13, %v879_v56  ;;  %v3705_v38 = vld [vmem:[#allocation39_spill] sm:$0xff] }
 0x17a   :  { %v896_v35 = vand.u32 2147483647, %v768_v16  ;;  %v1047_v54 = vadd.f32 %v1046_v49, %v895_v50  ;;  %v943_v37 = vadd.f32 %v3705_v38, %v3704_v41  ;;  %v985_v9 = vadd.f32 %v2981_v15, %v2974_v31 }
 0x17b   :  { %v915_v10 = vand.u32 2147483647, %v787_v58  ;;  %v916_v51 = vand.u32 2147483647, %v788_v1  ;;  %v912_v0 = vand.u32 2147483647, %v784_v42  ;;  %v1068_v61 = vadd.f32 %v1067_v28, %v911_v48 }
 0x17c   :  { %v588_v14 = vpop.permute.xlu0 %587  ;;  %v592_v8 = vpop.permute.xlu1 %591  ;;  %v1006_v19 = vadd.f32 %v1005_v27, %v864_v24  ;;  %v965_v58 = vrot.slane %v964_v22, 4  ;;  %v1027_v1 = vadd.f32 %v1026_v29, %v880_v30  ;;  %v1048_v40 = vadd.f32 %v1047_v54, %v896_v35 }
 0x17d   :  { %v1077_v53 = vadd.f32 %v1076_v47, %v915_v10  ;;  %v789_v11 = vsub.f32 %v2977_v55, %v588_v14  ;;  %v790_v18 = vsub.f32 %v2977_v55, %v592_v8  ;;  %v944_v62 = vrot.slane %v943_v37, 4 }
 0x17e   :  { %v986_v47 = vrot.slane %v985_v9, 4  ;;  %v1069_v10 = vadd.f32 %v1068_v61, %v912_v0  ;;  %v966_v45 = vadd.f32 %v965_v58, %v964_v22  ;;  %v1028_v14 = vrot.slane %v1027_v1, 4 }
 0x17f   :  { %v1078_v57 = vadd.f32 %v1077_v53, %v916_v51  ;;  %v917_v5 = vand.u32 2147483647, %v789_v11  ;;  %v918_v34 = vand.u32 2147483647, %v790_v18  ;;  %v1007_v51 = vrot.slane %v1006_v19, 4 }
 0x180   :  { %v596_v6 = vpop.permute.xlu0 %595  ;;  %v600_v26 = vpop.permute.xlu1 %599  ;;  %v1049_v8 = vrot.slane %v1048_v40, 4  ;;  %v945_v18 = vadd.f32 %v944_v62, %v943_v37  ;;  %v987_v56 = vadd.f32 %v986_v47, %v985_v9  ;;  %v1070_v13 = vrot.slane %v1069_v10, 4 }
 0x181   :  { %v1079_v3 = vadd.f32 %v1078_v57, %v917_v5  ;;  %v791_v43 = vsub.f32 %v2977_v55, %v596_v6  ;;  %v792_v39 = vsub.f32 %v2977_v55, %v600_v26  ;;  %v1008_v50 = vadd.f32 %v1007_v51, %v1006_v19 }
 0x182   :  { %v1029_v24 = vadd.f32 %v1028_v14, %v1027_v1  ;;  %v1050_v42 = vadd.f32 %v1049_v8, %v1048_v40  ;;  %v946_v26 = vrot.slane %v945_v18, 2  ;;  %v988_v27 = vrot.slane %v987_v56, 2 }
 0x183   :  { %v1080_v60 = vadd.f32 %v1079_v3, %v918_v34  ;;  %v919_v36 = vand.u32 2147483647, %v791_v43  ;;  %v920_v52 = vand.u32 2147483647, %v792_v39  ;;  %v967_v34 = vrot.slane %v966_v45, 2 }
 0x184   :  { %v604_v20 = vpop.permute.xlu0 %603  ;;  %v608_v17 = vpop.permute.xlu1 %607  ;;  %v1071_v3 = vadd.f32 %v1070_v13, %v1069_v10  ;;  %v1009_v46 = vrot.slane %v1008_v50, 2  ;;  %v1030_v54 = vrot.slane %v1029_v24, 2  ;;  %v989_v38 = vadd.f32 %v988_v27, %v987_v56 }
 0x185   :  { %v1081_v63 = vadd.f32 %v1080_v60, %v919_v36  ;;  %v793_v32 = vsub.f32 %v2977_v55, %v604_v20  ;;  %v794_v23 = vsub.f32 %v2977_v55, %v608_v17  ;;  %v968_v35 = vadd.f32 %v967_v34, %v966_v45 }
 0x186   :  { %v1051_v60 = vrot.slane %v1050_v42, 2  ;;  %v1072_v37 = vrot.slane %v1071_v3, 2  ;;  %v947_v9 = vadd.f32 %v946_v26, %v945_v18  ;;  %v1010_v0 = vadd.f32 %v1009_v46, %v1008_v50  ;;  %v2386_v26 = vld [vmem:[#allocation3] sm:$0xff] }
 0x187   :  { %v1082_v25 = vadd.f32 %v1081_v63, %v920_v52  ;;  %v921_v33 = vand.u32 2147483647, %v793_v32  ;;  %v922_v12 = vand.u32 2147483647, %v794_v23  ;;  %v1031_v20 = vadd.f32 %v1030_v54, %v1029_v24 }
 0x188   :  { %v612_v31 = vpop.permute.xlu0 %611  ;;  %v616_v15 = vpop.permute.xlu1 %615  ;;  %v969_v17 = vrot.slane %v968_v35, 1  ;;  %v1052_v19 = vadd.f32 %v1051_v60, %v1050_v42  ;;  %v990_v32 = vrot.slane %v989_v38, 1  ;;  %v1073_v23 = vadd.f32 %v1072_v37, %v1071_v3 }
 0x189   :  { %v1083_v7 = vadd.f32 %v1082_v25, %v921_v33  ;;  %v795_v44 = vsub.f32 %v2977_v55, %v612_v31  ;;  %v796_v4 = vsub.f32 %v2977_v55, %v616_v15  ;;  %v948_v58 = vrot.slane %v947_v9, 1 }
 0x18a   :  { %v1011_v1 = vrot.slane %v1010_v0, 1  ;;  %v1032_v40 = vrot.slane %v1031_v20, 1  ;;  %v970_v25 = vadd.f32 %v969_v17, %v968_v35  ;;  %v1053_v33 = vrot.slane %v1052_v19, 1 }
 0x18b   :  { %v1084_v59 = vadd.f32 %v1083_v7, %v922_v12  ;;  %v923_v53 = vand.u32 2147483647, %v795_v44  ;;  %v924_v11 = vand.u32 2147483647, %v796_v4  ;;  %v991_v62 = vadd.f32 %v990_v32, %v989_v38 }
 0x18c   :  { %v620_v21 = vpop.permute.xlu0 %619  ;;  %v624_v16 = vpop.permute.xlu1 %623  ;;  %v1074_v47 = vrot.slane %v1073_v23, 1  ;;  %v949_v10 = vadd.f32 %v948_v58, %v947_v9  ;;  %v1012_v31 = vadd.f32 %v1011_v1, %v1010_v0  ;;  %v1033_v51 = vadd.f32 %v1032_v40, %v1031_v20 }
 0x18d   :  { %v1085_v49 = vadd.f32 %v1084_v59, %v923_v53  ;;  %v797_v57 = vsub.f32 %v2977_v55, %v620_v21  ;;  %v798_v5 = vsub.f32 %v2977_v55, %v624_v16  ;;  %v1054_v44 = vadd.f32 %v1053_v33, %v1052_v19 }
 0x18e   :  { %v1107_v7 = vsel %vm1106_vm0, %v970_v25, %v949_v10  ;;  %v1075_v14 = vadd.f32 %v1074_v47, %v1073_v23 }
 0x18f   :  { %v1086_v48 = vadd.f32 %v1085_v49, %v924_v11  ;;  %v925_v28 = vand.u32 2147483647, %v797_v57  ;;  %v926_v6 = vand.u32 2147483647, %v798_v5  ;;  %v1109_v45 = vsel %vm1108_vm1, %v991_v62, %v1107_v7  ;;  %v3706_v11 = vld [vmem:[#allocation13_spill] sm:$0xff] }
 0x190   :  { %v628_v43 = vpop.permute.xlu0 %627  ;;  %v632_v39 = vpop.permute.xlu1 %631  ;;  %v1111_v8 = vsel %vm1110_vm2, %v1012_v31, %v1109_v45  ;;  %v1144_v18 = vmul.f32 123.0, %v3706_v11  ;;  %v1097_v56 = vmul.f32 127.0, %v3706_v11  ;;  %v1156_v5 = vmul.f32 121.0, %v3706_v11 }
 0x191   :  { %v1087_v22 = vadd.f32 %v1086_v48, %v925_v28  ;;  %v799_v30 = vsub.f32 %v2977_v55, %v628_v43  ;;  %v800_v29 = vsub.f32 %v2977_v55, %v632_v39  ;;  %v1113_v53 = vsel %vm1112_vm3, %v1033_v51, %v1111_v8  ;;  %v3708_v43 = vld [vmem:[#allocation12_spill] sm:$0xff] }
 0x192   :  { %v1115_v21 = vsel %vm1114_vm4, %v1054_v44, %v1113_v53  ;;  %v1132_v34 = vmul.f32 125.0, %v3706_v11  ;;  %v1168_v48 = vmul.f32 119.0, %v3706_v11  ;;  %v3709_v39 = vsub.s32 1, %v3708_v43 }
 0x193   :  { %v1088_v36 = vadd.f32 %v1087_v22, %v926_v6  ;;  %v927_v52 = vand.u32 2147483647, %v799_v30  ;;  %v928_v41 = vand.u32 2147483647, %v800_v29  ;;  %v1117_v16 = vsel %vm1116_vm5, %v1075_v14, %v1115_v21  ;;  %v2337_v6 = vld [vmem:[#allocation6 + $0x1] ss:$0 sm:$0xff] }
 0x194   :  { %v3042_v27 = vadd.f32 %v2386_v26, %v2337_v6  ;;  %v3710_v22 = vsub.s32 2, %v3708_v43  ;;  %v3711_v29 = vsub.s32 3, %v3708_v43  ;;  %v3712_v40 = vsub.s32 4, %v3708_v43 }
 0x195   :  { %v1089_v61 = vadd.f32 %v1088_v36, %v927_v52  ;;  %v3714_v47 = vsub.s32 6, %v3708_v43  ;;  %v3715_v31 = vsub.s32 7, %v3708_v43 }
 0x196   :  { %3707 = vst [vmem:[#allocation36_spill] sm:$0xff] %v3042_v27  ;;  %v3046_v3 = vrot.slane %v3042_v27, %v2485_v2  ;;  %v3052_v46 = vrot.slane %v3042_v27, %v3709_v39  ;;  %v3058_v30 = vrot.slane %v3042_v27, %v3710_v22  ;;  %v3067_v35 = vrot.slane %v3042_v27, %v3711_v29 }
 0x197   :  { %v1090_v63 = vadd.f32 %v1089_v61, %v928_v41  ;;  %v3088_v25 = vrot.slane %v3042_v27, %v3712_v40  ;;  %v3106_v10 = vrot.slane %v3042_v27, %v3714_v47 }
 0x199   :  { %v1091_v55 = vrot.slane %v1090_v63, 4 }
 0x19b   :  { %v1092_v12 = vadd.f32 %v1091_v55, %v1090_v63 }
 0x19d   :  { %v1093_v15 = vrot.slane %v1092_v12, 2 }
 0x19f   :  { %v1094_v4 = vadd.f32 %v1093_v15, %v1092_v12  ;;  %v3713_v12 = vsub.s32 5, %v3708_v43  ;;  %v3116_v15 = vrot.slane %v3042_v27, %v3715_v31 }
 0x1a1   :  { %v1095_v59 = vrot.slane %v1094_v4, 1  ;;  %v3099_v62 = vrot.slane %v3042_v27, %v3713_v12 }
 0x1a3   :  { %v1096_v13 = vadd.f32 %v1095_v59, %v1094_v4 }
 0x1a5   :  { %v1119_v50 = vsel %vm1118_vm6, %v1096_v13, %v1117_v16 }
 0x1a6   :  { %v1145_v49 = vsub.f32 %v1144_v18, %v1119_v50  ;;  %v1121_v57 = vsub.f32 %v1097_v56, %v1119_v50  ;;  %v1157_v24 = vsub.f32 %v1156_v5, %v1119_v50  ;;  %v1133_v42 = vsub.f32 %v1132_v34, %v1119_v50 }
 0x1a7   :  { %v1169_v28 = vsub.f32 %v1168_v48, %v1119_v50 }
 0x1a8   :  { %1146 = vmax.xlane.f32.xlu1 %v1145_v49  ;;  %1122 = vmax.xlane.f32.xlu0 %v1121_v57 }
 0x1ac   :  { %1158 = vmax.xlane.f32.xlu1 %v1157_v24  ;;  %1134 = vmax.xlane.f32.xlu0 %v1133_v42 }
 0x1b0   :  { %1170 = vmax.xlane.f32.xlu1 %v1169_v28 }
 0x1c1   :  { %1245 = vbcast.lane.b32.xlu1 %v3046_v3, 256 }
 0x1c2   :  { %1249 = vbcast.lane.b32.xlu0 %v3046_v3, 264 }
 0x1c5   :  { %1312 = vbcast.lane.b32.xlu1 %v3052_v46, 256 }
 0x1c6   :  { %1379 = vbcast.lane.b32.xlu0 %v3058_v30, 256 }
 0x1c9   :  { %1316 = vbcast.lane.b32.xlu1 %v3052_v46, 264 }
 0x1ca   :  { %1253 = vbcast.lane.b32.xlu0 %v3046_v3, 272 }
 0x1cd   :  { %1383 = vbcast.lane.b32.xlu1 %v3058_v30, 264 }
 0x1ce   :  { %1446 = vbcast.lane.b32.xlu0 %v3067_v35, 256 }
 0x1d1   :  { %1320 = vbcast.lane.b32.xlu1 %v3052_v46, 272 }
 0x1d5   :  { %1450 = vbcast.lane.b32.xlu1 %v3067_v35, 264 }
 0x231   :  { %v1147_v54 = vpop.xlane.xlu1 %1146  ;;  %v1123_v60 = vpop.xlane.xlu0 %1122 }
 0x232   :  { %v1124_v36 = vsub.f32 %v1121_v57, %v1123_v60  ;;  %v1148_v9 = vsub.f32 %v1145_v49, %v1147_v54 }
 0x234   :  { %v1125_v52 = vmul.f32 1.442695, %v1124_v36  ;;  %v1149_v61 = vmul.f32 1.442695, %v1148_v9 }
 0x235   :  { %v1135_v41 = vpop.xlane.xlu0 %1134  ;;  %v1159_v38 = vpop.xlane.xlu1 %1158 }
 0x236   :  { %v1136_v37 = vsub.f32 %v1133_v42, %v1135_v41  ;;  %2346 = vpow2.f32 %v1125_v52  ;;  %v1160_v20 = vsub.f32 %v1157_v24, %v1159_v38 }
 0x238   :  { %v1137_v0 = vmul.f32 1.442695, %v1136_v37  ;;  %v1161_v19 = vmul.f32 1.442695, %v1160_v20 }
 0x239   :  { %v1171_v17 = vpop.xlane.xlu1 %1170  ;;  %v3161_v4 = vpop.permute.xlu0 %1249 }
 0x23a   :  { %2348 = vpow2.f32 %v1137_v0  ;;  %v1172_v63 = vsub.f32 %v1169_v28, %v1171_v17 }
 0x23b   :  { %2350 = vpow2.f32 %v1149_v61 }
 0x23c   :  { %2352 = vpow2.f32 %v1161_v19  ;;  %v1173_v32 = vmul.f32 1.442695, %v1172_v63 }
 0x23d   :  { %v3147_v51 = vpop.permute.xlu1 %1245  ;;  %v3169_v14 = vpop.permute.xlu0 %1379 }
 0x23e   :  { %2354 = vpow2.f32 %v1173_v32 }
 0x241   :  { %v3153_v7 = vpop.permute.xlu1 %1312  ;;  %v3175_v59 = vpop.permute.xlu0 %1253 }
 0x243   :  { %v3073_v23 = vpop.eup %2346 }
 0x244   :  { %1127 = vadd.xlane.f32.xlu1 %v3073_v23 }
 0x245   :  { %v3157_v44 = vpop.permute.xlu1 %1316  ;;  %v3181_v11 = vpop.permute.xlu0 %1446 }
 0x247   :  { %v3076_v58 = vpop.eup %2348 }
 0x248   :  { %1139 = vadd.xlane.f32.xlu0 %v3076_v58  ;;  %v3079_v1 = vpop.eup %2350 }
 0x249   :  { %v3082_v55 = vpop.eup %2352  ;;  %v3165_v45 = vpop.permute.xlu1 %1383 }
 0x24b   :  { %v3090_v33 = vpop.eup %2354 }
 0x24c   :  { %1151 = vadd.xlane.f32.xlu0 %v3079_v1 }
 0x24d   :  { %v3171_v8 = vpop.permute.xlu1 %1320 }
 0x250   :  { %1163 = vadd.xlane.f32.xlu0 %v3082_v55 }
 0x251   :  { %v3177_v53 = vpop.permute.xlu1 %1450 }
 0x254   :  { %1175 = vadd.xlane.f32.xlu0 %v3090_v33 }
 0x255   :  { %1513 = vbcast.lane.b32.xlu1 %v3088_v25, 256 }
 0x259   :  { %1257 = vbcast.lane.b32.xlu1 %v3046_v3, 280 }
 0x25d   :  { %1454 = vbcast.lane.b32.xlu1 %v3067_v35, 272 }
 0x261   :  { %1584 = vbcast.lane.b32.xlu1 %v3099_v62, 264 }
 0x265   :  { %1521 = vbcast.lane.b32.xlu1 %v3088_v25, 272 }
 0x269   :  { %1651 = vbcast.lane.b32.xlu1 %v3106_v10, 264 }
 0x26a   :  { %1387 = vbcast.lane.b32.xlu0 %v3058_v30, 272 }
 0x26d   :  { %1328 = vbcast.lane.b32.xlu1 %v3052_v46, 288 }
 0x26e   :  { %1517 = vbcast.lane.b32.xlu0 %v3088_v25, 264 }
 0x271   :  { %1588 = vbcast.lane.b32.xlu1 %v3099_v62, 272 }
 0x272   :  { %1324 = vbcast.lane.b32.xlu0 %v3052_v46, 280 }
 0x275   :  { %1718 = vbcast.lane.b32.xlu1 %v3116_v15, 264 }
 0x276   :  { %1580 = vbcast.lane.b32.xlu0 %v3099_v62, 256 }
 0x279   :  { %1525 = vbcast.lane.b32.xlu1 %v3088_v25, 280 }
 0x27a   :  { %1391 = vbcast.lane.b32.xlu0 %v3058_v30, 280 }
 0x27d   :  { %1265 = vbcast.lane.b32.xlu1 %v3046_v3, 296 }
 0x27e   :  { %1647 = vbcast.lane.b32.xlu0 %v3106_v10, 256 }
 0x281   :  { %1462 = vbcast.lane.b32.xlu1 %v3067_v35, 288 }
 0x282   :  { %1261 = vbcast.lane.b32.xlu0 %v3046_v3, 288 }
 0x285   :  { %1722 = vbcast.lane.b32.xlu1 %v3116_v15, 272 }
 0x286   :  { %1458 = vbcast.lane.b32.xlu0 %v3067_v35, 280 }
 0x289   :  { %1529 = vbcast.lane.b32.xlu1 %v3088_v25, 288 }
 0x28a   :  { %1714 = vbcast.lane.b32.xlu0 %v3116_v15, 256 }
 0x28d   :  { %1269 = vbcast.lane.b32.xlu1 %v3046_v3, 304 }
 0x28e   :  { %1395 = vbcast.lane.b32.xlu0 %v3058_v30, 288 }
 0x291   :  { %1466 = vbcast.lane.b32.xlu1 %v3067_v35, 296 }
 0x292   :  { %1655 = vbcast.lane.b32.xlu0 %v3106_v10, 272 }
 0x295   :  { %1726 = vbcast.lane.b32.xlu1 %v3116_v15, 280 }
 0x296   :  { %1332 = vbcast.lane.b32.xlu0 %v3052_v46, 296 }
 0x299   :  { %1533 = vbcast.lane.b32.xlu1 %v3088_v25, 296 }
 0x29a   :  { %1592 = vbcast.lane.b32.xlu0 %v3099_v62, 280 }
 0x29d   :  { %1273 = vbcast.lane.b32.xlu1 %v3046_v3, 312 }
 0x29e   :  { %1399 = vbcast.lane.b32.xlu0 %v3058_v30, 296 }
 0x2a1   :  { %1470 = vbcast.lane.b32.xlu1 %v3067_v35, 304 }
 0x2a2   :  { %1659 = vbcast.lane.b32.xlu0 %v3106_v10, 280 }
 0x2a5   :  { %1730 = vbcast.lane.b32.xlu1 %v3116_v15, 288 }
 0x2a6   :  { %1336 = vbcast.lane.b32.xlu0 %v3052_v46, 304 }
 0x2a9   :  { %1537 = vbcast.lane.b32.xlu1 %v3088_v25, 304 }
 0x2aa   :  { %1596 = vbcast.lane.b32.xlu0 %v3099_v62, 288 }
 0x2ad   :  { %1277 = vbcast.lane.b32.xlu1 %v3046_v3, 320 }
 0x2ae   :  { %1403 = vbcast.lane.b32.xlu0 %v3058_v30, 304 }
 0x2b1   :  { %1474 = vbcast.lane.b32.xlu1 %v3067_v35, 312 }
 0x2b2   :  { %1663 = vbcast.lane.b32.xlu0 %v3106_v10, 288 }
 0x2b5   :  { %1734 = vbcast.lane.b32.xlu1 %v3116_v15, 296 }
 0x2b6   :  { %1340 = vbcast.lane.b32.xlu0 %v3052_v46, 312 }
 0x2b9   :  { %1541 = vbcast.lane.b32.xlu1 %v3088_v25, 312 }
 0x2ba   :  { %1600 = vbcast.lane.b32.xlu0 %v3099_v62, 296 }
 0x2bd   :  { %1281 = vbcast.lane.b32.xlu1 %v3046_v3, 328 }
 0x2be   :  { %1407 = vbcast.lane.b32.xlu0 %v3058_v30, 312 }
 0x2c1   :  { %1478 = vbcast.lane.b32.xlu1 %v3067_v35, 320 }
 0x2c2   :  { %1667 = vbcast.lane.b32.xlu0 %v3106_v10, 296 }
 0x2c5   :  { %1738 = vbcast.lane.b32.xlu1 %v3116_v15, 304 }
 0x2c6   :  { %1344 = vbcast.lane.b32.xlu0 %v3052_v46, 320 }
 0x2c9   :  { %1545 = vbcast.lane.b32.xlu1 %v3088_v25, 320 }
 0x2ca   :  { %1604 = vbcast.lane.b32.xlu0 %v3099_v62, 304 }
 0x2cd   :  { %v1128_v18 = vpop.xlane.xlu1 %1127  ;;  %1285 = vbcast.lane.b32.xlu1 %v3046_v3, 336 }
 0x2ce   :  { %1411 = vbcast.lane.b32.xlu0 %v3058_v30, 320 }
 0x2d1   :  { %v3185_v56 = vpop.permute.xlu1 %1513  ;;  %v1140_v13 = vpop.xlane.xlu0 %1139  ;;  %1482 = vbcast.lane.b32.xlu1 %v3067_v35, 328 }
 0x2d2   :  { %1671 = vbcast.lane.b32.xlu0 %v3106_v10, 304  ;;  %2356 = vrcp.f32 %v1140_v13 }
 0x2d3   :  { %2358 = vrcp.f32 %v1128_v18 }
 0x2d5   :  { %v3189_v21 = vpop.permute.xlu1 %1257  ;;  %v1152_v16 = vpop.xlane.xlu0 %1151  ;;  %1742 = vbcast.lane.b32.xlu1 %v3116_v15, 312 }
 0x2d6   :  { %2360 = vrcp.f32 %v1152_v16  ;;  %1348 = vbcast.lane.b32.xlu0 %v3052_v46, 328  ;;  %v1191_v16 = vcombine.high %v3042_v27, %v3042_v27 }
 0x2d9   :  { %v3193_v50 = vpop.permute.xlu1 %1454  ;;  %v1164_v49 = vpop.xlane.xlu0 %1163  ;;  %1549 = vbcast.lane.b32.xlu1 %v3088_v25, 328 }
 0x2da   :  { %2362 = vrcp.f32 %v1164_v49  ;;  %1608 = vbcast.lane.b32.xlu0 %v3099_v62, 312 }
 0x2dd   :  { %v3197_v57 = vpop.permute.xlu1 %1584  ;;  %v1176_v5 = vpop.xlane.xlu0 %1175  ;;  %1289 = vbcast.lane.b32.xlu1 %v3046_v3, 344 }
 0x2de   :  { %2364 = vrcp.f32 %v1176_v5  ;;  %1415 = vbcast.lane.b32.xlu0 %v3058_v30, 328 }
 0x2df   :  { %v2357_v34 = vpop.eup %2356 }
 0x2e0   :  { %v2359_v48 = vpop.eup %2358  ;;  %v1142_v6 = vmul.f32 %v2357_v34, %v3076_v58 }
 0x2e1   :  { %v3201_v24 = vpop.permute.xlu1 %1521  ;;  %v3203_v42 = vpop.permute.xlu0 %1387  ;;  %1486 = vbcast.lane.b32.xlu1 %v3067_v35, 336  ;;  %v1130_v39 = vmul.f32 %v2359_v48, %v3073_v23 }
 0x2e2   :  { %1675 = vbcast.lane.b32.xlu0 %v3106_v10, 312 }
 0x2e3   :  { %v2361_v28 = vpop.eup %2360  ;;  %v1143_v54 = vadd.f32 %v1142_v6, %v1130_v39 }
 0x2e4   :  { %v1154_v22 = vmul.f32 %v2361_v28, %v3079_v1  ;;  %v3716_v1 = vld [vmem:[#allocation25_spill] sm:$0xff] }
 0x2e5   :  { %v3208_v26 = vpop.permute.xlu1 %1651  ;;  %v3210_v43 = vpop.permute.xlu0 %1517  ;;  %1746 = vbcast.lane.b32.xlu1 %v3116_v15, 320  ;;  %v1205_v39 = vrot.slane %v1191_v16, %v3716_v1 }
 0x2e6   :  { %1352 = vbcast.lane.b32.xlu0 %v3052_v46, 336  ;;  %v1155_v41 = vadd.f32 %v1154_v22, %v1143_v54 }
 0x2e7   :  { %v2363_v29 = vpop.eup %2362  ;;  %v1207_v22 = vcombine.high %v1205_v39, %v1205_v39 }
 0x2e8   :  { %v1166_v60 = vmul.f32 %v2363_v29, %v3082_v55  ;;  %v1198_v55 = vrot.slane %v3042_v27, %v3716_v1 }
 0x2e9   :  { %v3217_v36 = vpop.permute.xlu1 %1328  ;;  %v3219_v52 = vpop.permute.xlu0 %1324  ;;  %1553 = vbcast.lane.b32.xlu1 %v3088_v25, 336 }
 0x2ea   :  { %1612 = vbcast.lane.b32.xlu0 %v3099_v62, 320  ;;  %v1167_v37 = vadd.f32 %v1166_v60, %v1155_v41  ;;  %v3252_v12 = vrot.slane %v1198_v55, %v3716_v1  ;;  %v1206_v47 = vcombine.high %v1198_v55, %v1198_v55 }
 0x2eb   :  { %v2365_v38 = vpop.eup %2364 }
 0x2ec   :  { %v1178_v9 = vmul.f32 %v2365_v38, %v3090_v33  ;;  %v3262_v13 = vrot.slane %v3252_v12, %v2485_v2  ;;  %v1228_v49 = vrot.slane %v1206_v47, %v3716_v1 }
 0x2ed   :  { %v3224_v0 = vpop.permute.xlu1 %1588  ;;  %v3226_v61 = vpop.permute.xlu0 %1580  ;;  %1293 = vbcast.lane.b32.xlu1 %v3046_v3, 352 }
 0x2ee   :  { %1419 = vbcast.lane.b32.xlu0 %v3058_v30, 336  ;;  %v1179_v20 = vadd.f32 %v1178_v9, %v1167_v37  ;;  %v1238_v5 = vcombine.high %v1228_v49, %v1228_v49  ;;  %v1816_v28 = vsub.f32 %v3262_v13, %v3147_v51  ;;  %v1817_v6 = vsub.f32 %v3262_v13, %v3161_v4 }
 0x2ef   :  { %v1818_v51 = vsub.f32 %v3262_v13, %v3175_v59  ;;  %v1819_v4 = vsub.f32 %v3262_v13, %v3189_v21  ;;  %v3291_v37 = vrot.slane %v1207_v22, %v3716_v1 }
 0x2f0   :  { %1180 = vst [vmem:[#allocation8] sm:$0xff] %v1179_v20  ;;  %v3280_v29 = vrot.slane %v1238_v5, %v2485_v2  ;;  %v1944_v41 = vand.u32 2147483647, %v1816_v28  ;;  %v1945_v38 = vand.u32 2147483647, %v1817_v6  ;;  %v3305_v28 = vrot.slane %v1205_v39, %v3716_v1 }
 0x2f1   :  { %v3230_v17 = vpop.permute.xlu1 %1718  ;;  %v3232_v19 = vpop.permute.xlu0 %1391  ;;  %1490 = vbcast.lane.b32.xlu1 %v3067_v35, 344  ;;  %v1946_v16 = vand.u32 2147483647, %v1818_v51  ;;  %v1239_v5 = vcombine.high %v3291_v37, %v3291_v37 }
 0x2f2   :  { %1679 = vbcast.lane.b32.xlu0 %v3106_v10, 320  ;;  %v1865_v9 = vsub.f32 %v3280_v29, %v3177_v53  ;;  %v1864_v20 = vsub.f32 %v3280_v29, %v3181_v11  ;;  %v2072_v59 = vadd.f32 %v1945_v38, %v1944_v41  ;;  %v1866_v53 = vsub.f32 %v3280_v29, %v3193_v50 }
 0x2f3   :  { %v1947_v11 = vand.u32 2147483647, %v1819_v4  ;;  %v3316_v51 = vrot.slane %v1239_v5, %v2485_v2  ;;  %v3323_v50 = vrot.slane %v3305_v28, %v2485_v2 }
 0x2f4   :  { %v1993_v6 = vand.u32 2147483647, %v1865_v9  ;;  %v1992_v22 = vand.u32 2147483647, %v1864_v20 }
 0x2f5   :  { %v3236_v63 = vpop.permute.xlu1 %1525  ;;  %v3238_v32 = vpop.permute.xlu0 %1647  ;;  %1750 = vbcast.lane.b32.xlu1 %v3116_v15, 328 }
 0x2f6   :  { %1356 = vbcast.lane.b32.xlu0 %v3052_v46, 344  ;;  %v2135_v20 = vadd.f32 %v1993_v6, %v1992_v22 }
 0x2f9   :  { %v3242_v23 = vpop.permute.xlu1 %1265  ;;  %v1262_v58 = vpop.permute.xlu0 %1261  ;;  %1557 = vbcast.lane.b32.xlu1 %v3088_v25, 344 }
 0x2fa   :  { %1616 = vbcast.lane.b32.xlu0 %v3099_v62, 328  ;;  %v1820_v21 = vsub.f32 %v3262_v13, %v1262_v58  ;;  %v2073_v58 = vadd.f32 %v2072_v59, %v1946_v16  ;;  %v1821_v1 = vsub.f32 %v3262_v13, %v3242_v23  ;;  %v1881_v59 = vsub.f32 %v3323_v50, %v3210_v43 }
 0x2fb   :  { %v3341_v43 = vrot.slane %v1228_v49, %v2485_v2 }
 0x2fc   :  { %v1948_v39 = vand.u32 2147483647, %v1820_v21  ;;  %v2074_v4 = vadd.f32 %v2073_v58, %v1947_v11  ;;  %v1949_v11 = vand.u32 2147483647, %v1821_v1 }
 0x2fd   :  { %v3248_v40 = vpop.permute.xlu1 %1462  ;;  %v1459_v33 = vpop.permute.xlu0 %1458  ;;  %1297 = vbcast.lane.b32.xlu1 %v3046_v3, 360 }
 0x2fe   :  { %1423 = vbcast.lane.b32.xlu0 %v3058_v30, 344  ;;  %v1867_v27 = vsub.f32 %v3280_v29, %v1459_v33  ;;  %v1994_v33 = vand.u32 2147483647, %v1866_v53  ;;  %v1868_v16 = vsub.f32 %v3280_v29, %v3248_v40  ;;  %v1929_v53 = vsub.f32 %v3316_v51, %v3230_v17 }
 0x2ff   :  { %v2075_v58 = vadd.f32 %v2074_v4, %v1948_v39  ;;  %v1880_v40 = vsub.f32 %v3323_v50, %v3185_v56  ;;  %v1882_v17 = vsub.f32 %v3323_v50, %v3201_v24  ;;  %v2009_v39 = vand.u32 2147483647, %v1881_v59 }
 0x300   :  { %v1995_v5 = vand.u32 2147483647, %v1867_v27  ;;  %v1236_v27 = vcombine.high %v3252_v12, %v3252_v12  ;;  %v2136_v6 = vadd.f32 %v2135_v20, %v1994_v33  ;;  %v2057_v12 = vand.u32 2147483647, %v1929_v53 }
 0x301   :  { %v3255_v31 = vpop.permute.xlu1 %1722  ;;  %v3257_v18 = vpop.permute.xlu0 %1714  ;;  %1494 = vbcast.lane.b32.xlu1 %v3067_v35, 352  ;;  %v2076_v33 = vadd.f32 %v2075_v58, %v1949_v11  ;;  %v1832_v24 = vsub.f32 %v3341_v43, %v3153_v7  ;;  %v2010_v11 = vand.u32 2147483647, %v1882_v17 }
 0x302   :  { %1683 = vbcast.lane.b32.xlu0 %v3106_v10, 328  ;;  %v2137_v4 = vadd.f32 %v2136_v6, %v1995_v5  ;;  %v1930_v49 = vsub.f32 %v3316_v51, %v3255_v31  ;;  %v1883_v31 = vsub.f32 %v3323_v50, %v3236_v63 }
 0x304   :  { %v2058_v58 = vand.u32 2147483647, %v1930_v49 }
 0x305   :  { %v3268_v34 = vpop.permute.xlu1 %1529  ;;  %v3270_v48 = vpop.permute.xlu0 %1395  ;;  %1754 = vbcast.lane.b32.xlu1 %v3116_v15, 336 }
 0x306   :  { %1360 = vbcast.lane.b32.xlu0 %v3052_v46, 352 }
 0x309   :  { %v1270_v54 = vpop.permute.xlu1 %1269  ;;  %v3282_v60 = vpop.permute.xlu0 %1655  ;;  %1561 = vbcast.lane.b32.xlu1 %v3088_v25, 352 }
 0x30a   :  { %3717 = vst [vmem:[#allocation14_spill] sm:$0xff] %v3282_v60  ;;  %1620 = vbcast.lane.b32.xlu0 %v3099_v62, 336  ;;  %v1822_v9 = vsub.f32 %v3262_v13, %v1270_v54  ;;  %v1928_v54 = vsub.f32 %v3316_v51, %v3257_v18  ;;  %v1996_v18 = vand.u32 2147483647, %v1868_v16 }
 0x30c   :  { %v1950_v22 = vand.u32 2147483647, %v1822_v9  ;;  %v2056_v56 = vand.u32 2147483647, %v1928_v54  ;;  %v2008_v9 = vand.u32 2147483647, %v1880_v40  ;;  %v2138_v54 = vadd.f32 %v2137_v4, %v1996_v18 }
 0x30d   :  { %v1467_v55 = vpop.permute.xlu1 %1466  ;;  %v3297_v47 = vpop.permute.xlu0 %1332  ;;  %1301 = vbcast.lane.b32.xlu1 %v3046_v3, 368  ;;  %v1960_v4 = vand.u32 2147483647, %v1832_v24 }
 0x30e   :  { %3718 = vst [vmem:[#allocation15_spill] sm:$0xff] %v3297_v47  ;;  %1427 = vbcast.lane.b32.xlu0 %v3058_v30, 352  ;;  %v1869_v1 = vsub.f32 %v3280_v29, %v1467_v55  ;;  %v3360_v55 = vrot.slane %v1236_v27, %v2485_v2  ;;  %v2077_v59 = vadd.f32 %v2076_v33, %v1950_v22 }
 0x30f   :  { %v2219_v7 = vadd.f32 %v2057_v12, %v2056_v56  ;;  %v1884_v27 = vsub.f32 %v3323_v50, %v3268_v34  ;;  %v3381_v22 = vrot.slane %v3291_v37, %v2485_v2 }
 0x310   :  { %v1997_v16 = vand.u32 2147483647, %v1869_v1  ;;  %v1848_v17 = vsub.f32 %v3360_v55, %v3169_v14  ;;  %v1849_v49 = vsub.f32 %v3360_v55, %v3165_v45  ;;  %v1834_v45 = vsub.f32 %v3341_v43, %v3171_v8 }
 0x311   :  { %v3310_v41 = vpop.permute.xlu1 %1726  ;;  %v3312_v38 = vpop.permute.xlu0 %1592  ;;  %1498 = vbcast.lane.b32.xlu1 %v3067_v35, 360  ;;  %v2012_v37 = vand.u32 2147483647, %v1884_v27  ;;  %v2220_v33 = vadd.f32 %v2219_v7, %v2058_v58 }
 0x312   :  { %1687 = vbcast.lane.b32.xlu0 %v3106_v10, 336  ;;  %v1931_v5 = vsub.f32 %v3316_v51, %v3310_v41  ;;  %v1833_v41 = vsub.f32 %v3341_v43, %v3157_v44  ;;  %v2139_v1 = vadd.f32 %v2138_v54, %v1997_v16  ;;  %v1237_v44 = vcombine.high %v3305_v28, %v3305_v28 }
 0x313   :  { %v1897_v28 = vsub.f32 %v3381_v22, %v3197_v57  ;;  %v1962_v27 = vand.u32 2147483647, %v1834_v45 }
 0x314   :  { %v1961_v24 = vand.u32 2147483647, %v1833_v41  ;;  %v3408_v8 = vrot.slane %v1237_v44, %v2485_v2  ;;  %v1898_v41 = vsub.f32 %v3381_v22, %v3224_v0 }
 0x315   :  { %v3330_v23 = vpop.permute.xlu1 %1533  ;;  %v3332_v21 = vpop.permute.xlu0 %1399  ;;  %1758 = vbcast.lane.b32.xlu1 %v3116_v15, 344 }
 0x316   :  { %1364 = vbcast.lane.b32.xlu0 %v3052_v46, 360  ;;  %v1885_v34 = vsub.f32 %v3323_v50, %v3330_v23  ;;  %v2093_v7 = vadd.f32 %v1961_v24, %v1960_v4  ;;  %v1913_v4 = vsub.f32 %v3408_v8, %v3208_v26 }
 0x318   :  { %v2013_v16 = vand.u32 2147483647, %v1885_v34  ;;  %v1851_v34 = vsub.f32 %v3360_v55, %v3232_v19  ;;  %v1836_v19 = vsub.f32 %v3341_v43, %v3217_v36 }
 0x319   :  { %v1274_v47 = vpop.permute.xlu1 %1273  ;;  %v3352_v60 = vpop.permute.xlu0 %1659  ;;  %1565 = vbcast.lane.b32.xlu1 %v3088_v25, 360 }
 0x31a   :  { %3719 = vst [vmem:[#allocation23_spill] sm:$0xff] %v3352_v60  ;;  %v1823_v20 = vsub.f32 %v3262_v13, %v1274_v47  ;;  %1624 = vbcast.lane.b32.xlu0 %v3099_v62, 344  ;;  %v2156_v47 = vadd.f32 %v2009_v39, %v2008_v9  ;;  %v2059_v39 = vand.u32 2147483647, %v1931_v5  ;;  %v1896_v9 = vsub.f32 %v3381_v22, %v3226_v61 }
 0x31b   :  { %v1979_v45 = vand.u32 2147483647, %v1851_v34  ;;  %v3722_v34 = vld [vmem:[#allocation15_spill] sm:$0xff] }
 0x31c   :  { %v1951_v53 = vand.u32 2147483647, %v1823_v20  ;;  %v2157_v12 = vadd.f32 %v2156_v47, %v2010_v11  ;;  %v1977_v11 = vand.u32 2147483647, %v1849_v49  ;;  %v1850_v47 = vsub.f32 %v3360_v55, %v3203_v42 }
 0x31d   :  { %v1471_v6 = vpop.permute.xlu1 %1470  ;;  %v3366_v60 = vpop.permute.xlu0 %1336  ;;  %1305 = vbcast.lane.b32.xlu1 %v3046_v3, 376  ;;  %v2011_v3 = vand.u32 2147483647, %v1883_v31  ;;  %v1835_v42 = vsub.f32 %v3341_v43, %v3219_v52  ;;  %v1899_v52 = vsub.f32 %v3381_v22, %v3312_v38 }
 0x31e   :  { %v3371_v63 = vadd.f32 %v2077_v59, %v1951_v53  ;;  %v1870_v40 = vsub.f32 %v3280_v29, %v1471_v6  ;;  %1431 = vbcast.lane.b32.xlu0 %v3058_v30, 360  ;;  %v2221_v59 = vadd.f32 %v2220_v33, %v2059_v39  ;;  %v1976_v53 = vand.u32 2147483647, %v1848_v17 }
 0x31f   :  { %v2158_v31 = vadd.f32 %v2157_v12, %v2011_v3  ;;  %v2024_v17 = vand.u32 2147483647, %v1896_v9  ;;  %v1978_v39 = vand.u32 2147483647, %v1850_v47  ;;  %v2094_v12 = vadd.f32 %v2093_v7, %v1962_v27 }
 0x320   :  { %v1998_v18 = vand.u32 2147483647, %v1870_v40  ;;  %v2025_v40 = vand.u32 2147483647, %v1897_v28  ;;  %v2026_v33 = vand.u32 2147483647, %v1898_v41  ;;  %v1912_v28 = vsub.f32 %v3408_v8, %v3238_v32 }
 0x321   :  { %v1731_v14 = vpop.permute.xlu1 %1730  ;;  %v3389_v56 = vpop.permute.xlu0 %1596  ;;  %1502 = vbcast.lane.b32.xlu1 %v3067_v35, 368  ;;  %v2159_v57 = vadd.f32 %v2158_v31, %v2012_v37  ;;  %v1852_v37 = vsub.f32 %v3360_v55, %v3270_v48  ;;  %v1853_v9 = vsub.f32 %v3360_v55, %v3332_v21  ;;  %v2041_v48 = vand.u32 2147483647, %v1913_v4  ;;  %v3720_v32 = vld [vmem:[#allocation14_spill] sm:$0xff]  ;;  %v3721_v27 = vld [vmem:[#allocation23_spill] sm:$0xff] }
 0x322   :  { %v3392_v20 = vadd.f32 %v2139_v1, %v1998_v18  ;;  %v1932_v23 = vsub.f32 %v3316_v51, %v1731_v14  ;;  %1691 = vbcast.lane.b32.xlu0 %v3106_v10, 344  ;;  %v2114_v1 = vadd.f32 %v1977_v11, %v1976_v53  ;;  %v1963_v14 = vand.u32 2147483647, %v1835_v42 }
 0x323   :  { %v2160_v3 = vadd.f32 %v2159_v57, %v2013_v16  ;;  %v1900_v26 = vsub.f32 %v3381_v22, %v3389_v56  ;;  %v1980_v53 = vand.u32 2147483647, %v1852_v37  ;;  %v1914_v11 = vsub.f32 %v3408_v8, %v3720_v32 }
 0x324   :  { %v2060_v5 = vand.u32 2147483647, %v1932_v23  ;;  %v2177_v23 = vadd.f32 %v2025_v40, %v2024_v17  ;;  %v2115_v24 = vadd.f32 %v2114_v1, %v1978_v39  ;;  %v2095_v47 = vadd.f32 %v2094_v12, %v1963_v14 }
 0x325   :  { %v1538_v58 = vpop.permute.xlu1 %1537  ;;  %v3404_v54 = vpop.permute.xlu0 %1403  ;;  %1762 = vbcast.lane.b32.xlu1 %v3116_v15, 352  ;;  %v2040_v7 = vand.u32 2147483647, %v1912_v28  ;;  %v1915_v40 = vsub.f32 %v3408_v8, %v3721_v27  ;;  %v2042_v39 = vand.u32 2147483647, %v1914_v11 }
 0x326   :  { %v3410_v6 = vadd.f32 %v2221_v59, %v2060_v5  ;;  %v1886_v61 = vsub.f32 %v3323_v50, %v1538_v58  ;;  %1368 = vbcast.lane.b32.xlu0 %v3052_v46, 368  ;;  %v2027_v59 = vand.u32 2147483647, %v1899_v52  ;;  %v1964_v5 = vand.u32 2147483647, %v1836_v19 }
 0x327   :  { %v1854_v21 = vsub.f32 %v3360_v55, %v3404_v54  ;;  %v2178_v58 = vadd.f32 %v2177_v23, %v2026_v33  ;;  %v2198_v14 = vadd.f32 %v2041_v48, %v2040_v7  ;;  %v2043_v37 = vand.u32 2147483647, %v1915_v40 }
 0x328   :  { %v2014_v2 = vand.u32 2147483647, %v1886_v61  ;;  %v2116_v61 = vadd.f32 %v2115_v24, %v1979_v45  ;;  %v1838_v33 = vsub.f32 %v3341_v43, %v3366_v60 }
 0x329   :  { %v1278_v18 = vpop.permute.xlu1 %1277  ;;  %v3420_v49 = vpop.permute.xlu0 %1663  ;;  %1569 = vbcast.lane.b32.xlu1 %v3088_v25, 368  ;;  %v2179_v17 = vadd.f32 %v2178_v58, %v2027_v59  ;;  %v1982_v4 = vand.u32 2147483647, %v1854_v21 }
 0x32a   :  { %v3427_v0 = vadd.f32 %v2160_v3, %v2014_v2  ;;  %v1824_v44 = vsub.f32 %v3262_v13, %v1278_v18  ;;  %1628 = vbcast.lane.b32.xlu0 %v3099_v62, 352  ;;  %v2117_v1 = vadd.f32 %v2116_v61, %v1980_v53  ;;  %v1837_v18 = vsub.f32 %v3341_v43, %v3722_v34 }
 0x32b   :  { %v2096_v53 = vadd.f32 %v2095_v47, %v1964_v5  ;;  %v1966_v11 = vand.u32 2147483647, %v1838_v33 }
 0x32c   :  { %v1952_v38 = vand.u32 2147483647, %v1824_v44  ;;  %v1916_v44 = vsub.f32 %v3408_v8, %v3420_v49  ;;  %v2199_v49 = vadd.f32 %v2198_v14, %v2042_v39 }
 0x32d   :  { %v1475_v31 = vpop.permute.xlu1 %1474  ;;  %v3441_v36 = vpop.permute.xlu0 %1340  ;;  %1506 = vbcast.lane.b32.xlu1 %v3067_v35, 376  ;;  %v2028_v35 = vand.u32 2147483647, %v1900_v26 }
 0x32e   :  { %v3445_v16 = vadd.f32 %v3371_v63, %v1952_v38  ;;  %v1871_v56 = vsub.f32 %v3280_v29, %v1475_v31  ;;  %1435 = vbcast.lane.b32.xlu0 %v3058_v30, 368  ;;  %v1981_v63 = vand.u32 2147483647, %v1853_v9  ;;  %v1965_v9 = vand.u32 2147483647, %v1837_v18 }
 0x32f   :  { %v2180_v52 = vadd.f32 %v2179_v17, %v2028_v35  ;;  %v2044_v48 = vand.u32 2147483647, %v1916_v44  ;;  %v1839_v60 = vsub.f32 %v3341_v43, %v3441_v36  ;;  %v2200_v32 = vadd.f32 %v2199_v49, %v2043_v37 }
 0x330   :  { %v1999_v57 = vand.u32 2147483647, %v1871_v56  ;;  %v2097_v61 = vadd.f32 %v2096_v53, %v1965_v9 }
 0x331   :  { %v1735_v42 = vpop.permute.xlu1 %1734  ;;  %v1601_v41 = vpop.permute.xlu0 %1600  ;;  %1766 = vbcast.lane.b32.xlu1 %v3116_v15, 360  ;;  %v2201_v36 = vadd.f32 %v2200_v32, %v2044_v48  ;;  %v1967_v7 = vand.u32 2147483647, %v1839_v60 }
 0x332   :  { %v2141_v3 = vadd.f32 %v3392_v20, %v1999_v57  ;;  %v1933_v2 = vsub.f32 %v3316_v51, %v1735_v42  ;;  %v1901_v54 = vsub.f32 %v3381_v22, %v1601_v41  ;;  %1695 = vbcast.lane.b32.xlu0 %v3106_v10, 352  ;;  %v2118_v20 = vadd.f32 %v2117_v1, %v1981_v63 }
 0x333   :  { %v2098_v47 = vadd.f32 %v2097_v61, %v1966_v11 }
 0x334   :  { %v2061_v12 = vand.u32 2147483647, %v1933_v2  ;;  %v2029_v19 = vand.u32 2147483647, %v1901_v54  ;;  %v2119_v31 = vadd.f32 %v2118_v20, %v1982_v4 }
 0x335   :  { %v1542_v23 = vpop.permute.xlu1 %1541  ;;  %v1408_v26 = vpop.permute.xlu0 %1407  ;;  %1703 = vbcast.lane.b32.xlu1 %v3106_v10, 368  ;;  %v2099_v2 = vadd.f32 %v2098_v47, %v1967_v7 }
 0x336   :  { %v2223_v38 = vadd.f32 %v3410_v6, %v2061_v12  ;;  %v2181_v24 = vadd.f32 %v2180_v52, %v2029_v19  ;;  %v1887_v45 = vsub.f32 %v3323_v50, %v1542_v23  ;;  %v1855_v28 = vsub.f32 %v3360_v55, %v1408_v26  ;;  %1372 = vbcast.lane.b32.xlu0 %v3052_v46, 376 }
 0x338   :  { %v2015_v59 = vand.u32 2147483647, %v1887_v45  ;;  %v1983_v56 = vand.u32 2147483647, %v1855_v28 }
 0x339   :  { %v1282_v6 = vpop.permute.xlu1 %1281  ;;  %v1668_v21 = vpop.permute.xlu0 %1667  ;;  %1770 = vbcast.lane.b32.xlu1 %v3116_v15, 368 }
 0x33a   :  { %v2162_v58 = vadd.f32 %v3427_v0, %v2015_v59  ;;  %v2120_v35 = vadd.f32 %v2119_v31, %v1983_v56  ;;  %v1825_v46 = vsub.f32 %v3262_v13, %v1282_v6  ;;  %v1917_v57 = vsub.f32 %v3408_v8, %v1668_v21  ;;  %1632 = vbcast.lane.b32.xlu0 %v3099_v62, 360 }
 0x33c   :  { %v1953_v63 = vand.u32 2147483647, %v1825_v46  ;;  %v2045_v5 = vand.u32 2147483647, %v1917_v57 }
 0x33d   :  { %v1479_v27 = vpop.permute.xlu1 %1478  ;;  %v1345_v40 = vpop.permute.xlu0 %1344  ;;  %1774 = vbcast.lane.b32.xlu1 %v3116_v15, 376 }
 0x33e   :  { %v2080_v42 = vadd.f32 %v3445_v16, %v1953_v63  ;;  %v2202_v0 = vadd.f32 %v2201_v36, %v2045_v5  ;;  %v1872_v41 = vsub.f32 %v3280_v29, %v1479_v27  ;;  %v1840_v17 = vsub.f32 %v3341_v43, %v1345_v40  ;;  %1439 = vbcast.lane.b32.xlu0 %v3058_v30, 376 }
 0x340   :  { %v2000_v54 = vand.u32 2147483647, %v1872_v41  ;;  %v1968_v1 = vand.u32 2147483647, %v1840_v17 }
 0x341   :  { %v1739_v39 = vpop.permute.xlu1 %1738  ;;  %v1605_v34 = vpop.permute.xlu0 %1604 }
 0x342   :  { %v2142_v18 = vadd.f32 %v2141_v3, %v2000_v54  ;;  %v2100_v4 = vadd.f32 %v2099_v2, %v1968_v1  ;;  %v1934_v52 = vsub.f32 %v3316_v51, %v1739_v39  ;;  %v1902_v15 = vsub.f32 %v3381_v22, %v1605_v34  ;;  %1699 = vbcast.lane.b32.xlu0 %v3106_v10, 360 }
 0x344   :  { %v2062_v16 = vand.u32 2147483647, %v1934_v52  ;;  %v2030_v44 = vand.u32 2147483647, %v1902_v15 }
 0x345   :  { %v1546_v12 = vpop.permute.xlu1 %1545  ;;  %v1412_v19 = vpop.permute.xlu0 %1411 }
 0x346   :  { %v2224_v14 = vadd.f32 %v2223_v38, %v2062_v16  ;;  %v2182_v20 = vadd.f32 %v2181_v24, %v2030_v44  ;;  %v1888_v30 = vsub.f32 %v3323_v50, %v1546_v12  ;;  %v1856_v37 = vsub.f32 %v3360_v55, %v1412_v19  ;;  %1636 = vbcast.lane.b32.xlu0 %v3099_v62, 368 }
 0x348   :  { %v2016_v3 = vand.u32 2147483647, %v1888_v30  ;;  %v1984_v33 = vand.u32 2147483647, %v1856_v37 }
 0x349   :  { %v1286_v23 = vpop.permute.xlu1 %1285  ;;  %v1672_v26 = vpop.permute.xlu0 %1671 }
 0x34a   :  { %v2163_v45 = vadd.f32 %v2162_v58, %v2016_v3  ;;  %v2121_v28 = vadd.f32 %v2120_v35, %v1984_v33  ;;  %v1826_v49 = vsub.f32 %v3262_v13, %v1286_v23  ;;  %v1918_v9 = vsub.f32 %v3408_v8, %v1672_v26  ;;  %1573 = vbcast.lane.b32.xlu0 %v3088_v25, 376 }
 0x34c   :  { %v1954_v38 = vand.u32 2147483647, %v1826_v49  ;;  %v2046_v24 = vand.u32 2147483647, %v1918_v9 }
 0x34d   :  { %v1483_v31 = vpop.permute.xlu1 %1482  ;;  %v1349_v48 = vpop.permute.xlu0 %1348 }
 0x34e   :  { %v2081_v60 = vadd.f32 %v2080_v42, %v1954_v38  ;;  %v2203_v59 = vadd.f32 %v2202_v0, %v2046_v24  ;;  %v1873_v56 = vsub.f32 %v3280_v29, %v1483_v31  ;;  %v1841_v53 = vsub.f32 %v3341_v43, %v1349_v48  ;;  %1640 = vbcast.lane.b32.xlu0 %v3099_v62, 376 }
 0x350   :  { %v2001_v32 = vand.u32 2147483647, %v1873_v56  ;;  %v1969_v11 = vand.u32 2147483647, %v1841_v53 }
 0x351   :  { %v1743_v6 = vpop.permute.xlu1 %1742  ;;  %v1609_v21 = vpop.permute.xlu0 %1608 }
 0x352   :  { %v2143_v58 = vadd.f32 %v2142_v18, %v2001_v32  ;;  %v2101_v35 = vadd.f32 %v2100_v4, %v1969_v11  ;;  %v1935_v25 = vsub.f32 %v3316_v51, %v1743_v6  ;;  %v1903_v46 = vsub.f32 %v3381_v22, %v1609_v21  ;;  %1707 = vbcast.lane.b32.xlu0 %v3106_v10, 376 }
 0x354   :  { %v2063_v57 = vand.u32 2147483647, %v1935_v25  ;;  %v2031_v61 = vand.u32 2147483647, %v1903_v46 }
 0x355   :  { %v1550_v36 = vpop.permute.xlu1 %1549  ;;  %v1416_v7 = vpop.permute.xlu0 %1415 }
 0x356   :  { %v2225_v63 = vadd.f32 %v2224_v14, %v2063_v57  ;;  %v2183_v5 = vadd.f32 %v2182_v20, %v2031_v61  ;;  %v1889_v62 = vsub.f32 %v3323_v50, %v1550_v36  ;;  %v1857_v47 = vsub.f32 %v3360_v55, %v1416_v7 }
 0x358   :  { %v2017_v27 = vand.u32 2147483647, %v1889_v62  ;;  %v1985_v40 = vand.u32 2147483647, %v1857_v47 }
 0x359   :  { %v1290_v42 = vpop.permute.xlu1 %1289  ;;  %v1676_v0 = vpop.permute.xlu0 %1675 }
 0x35a   :  { %v2164_v41 = vadd.f32 %v2163_v45, %v2017_v27  ;;  %v2122_v17 = vadd.f32 %v2121_v28, %v1985_v40  ;;  %v1827_v2 = vsub.f32 %v3262_v13, %v1290_v42  ;;  %v1919_v10 = vsub.f32 %v3408_v8, %v1676_v0 }
 0x35c   :  { %v1955_v54 = vand.u32 2147483647, %v1827_v2  ;;  %v2047_v1 = vand.u32 2147483647, %v1919_v10 }
 0x35d   :  { %v1487_v39 = vpop.permute.xlu1 %1486  ;;  %v1353_v34 = vpop.permute.xlu0 %1352 }
 0x35e   :  { %v2082_v18 = vadd.f32 %v2081_v60, %v1955_v54  ;;  %v2204_v4 = vadd.f32 %v2203_v59, %v2047_v1  ;;  %v1874_v52 = vsub.f32 %v3280_v29, %v1487_v39  ;;  %v1842_v15 = vsub.f32 %v3341_v43, %v1353_v34 }
 0x360   :  { %v2002_v16 = vand.u32 2147483647, %v1874_v52  ;;  %v1970_v44 = vand.u32 2147483647, %v1842_v15 }
 0x361   :  { %v1747_v12 = vpop.permute.xlu1 %1746  ;;  %v1613_v19 = vpop.permute.xlu0 %1612 }
 0x362   :  { %v2144_v14 = vadd.f32 %v2143_v58, %v2002_v16  ;;  %v2102_v20 = vadd.f32 %v2101_v35, %v1970_v44  ;;  %v1936_v30 = vsub.f32 %v3316_v51, %v1747_v12  ;;  %v1904_v37 = vsub.f32 %v3381_v22, %v1613_v19 }
 0x364   :  { %v2064_v3 = vand.u32 2147483647, %v1936_v30  ;;  %v2032_v33 = vand.u32 2147483647, %v1904_v37 }
 0x365   :  { %v1554_v23 = vpop.permute.xlu1 %1553  ;;  %v1420_v26 = vpop.permute.xlu0 %1419 }
 0x366   :  { %v3506_v45 = vadd.f32 %v2225_v63, %v2064_v3  ;;  %v2184_v28 = vadd.f32 %v2183_v5, %v2032_v33  ;;  %v1890_v49 = vsub.f32 %v3323_v50, %v1554_v23  ;;  %v1858_v9 = vsub.f32 %v3360_v55, %v1420_v26 }
 0x368   :  { %v2018_v38 = vand.u32 2147483647, %v1890_v49  ;;  %v1986_v24 = vand.u32 2147483647, %v1858_v9 }
 0x369   :  { %v1294_v31 = vpop.permute.xlu1 %1293  ;;  %v1680_v48 = vpop.permute.xlu0 %1679 }
 0x36a   :  { %v3510_v60 = vadd.f32 %v2164_v41, %v2018_v38  ;;  %v2123_v59 = vadd.f32 %v2122_v17, %v1986_v24  ;;  %v1828_v56 = vsub.f32 %v3262_v13, %v1294_v31  ;;  %v1920_v53 = vsub.f32 %v3408_v8, %v1680_v48 }
 0x36c   :  { %v1956_v32 = vand.u32 2147483647, %v1828_v56  ;;  %v2048_v11 = vand.u32 2147483647, %v1920_v53 }
 0x36d   :  { %v1491_v6 = vpop.permute.xlu1 %1490  ;;  %v1357_v21 = vpop.permute.xlu0 %1356 }
 0x36e   :  { %v2083_v58 = vadd.f32 %v2082_v18, %v1956_v32  ;;  %v2205_v35 = vadd.f32 %v2204_v4, %v2048_v11  ;;  %v1875_v25 = vsub.f32 %v3280_v29, %v1491_v6  ;;  %v1843_v46 = vsub.f32 %v3341_v43, %v1357_v21 }
 0x370   :  { %v2003_v57 = vand.u32 2147483647, %v1875_v25  ;;  %v1971_v61 = vand.u32 2147483647, %v1843_v46 }
 0x371   :  { %v3516_v36 = vpop.permute.xlu1 %1750  ;;  %v1617_v7 = vpop.permute.xlu0 %1616 }
 0x372   :  { %v2145_v63 = vadd.f32 %v2144_v14, %v2003_v57  ;;  %v2103_v5 = vadd.f32 %v2102_v20, %v1971_v61  ;;  %v1905_v62 = vsub.f32 %v3381_v22, %v1617_v7 }
 0x374   :  { %v2033_v47 = vand.u32 2147483647, %v1905_v62 }
 0x375   :  { %v3519_v27 = vpop.permute.xlu1 %1557  ;;  %v1424_v40 = vpop.permute.xlu0 %1423 }
 0x376   :  { %v3521_v42 = vadd.f32 %v2184_v28, %v2033_v47  ;;  %v1859_v0 = vsub.f32 %v3360_v55, %v1424_v40  ;;  %v1937_v40 = vsub.f32 %v3316_v51, %v3516_v36 }
 0x378   :  { %v1987_v41 = vand.u32 2147483647, %v1859_v0 }
 0x379   :  { %v1298_v17 = vpop.permute.xlu1 %1297  ;;  %v1684_v2 = vpop.permute.xlu0 %1683 }
 0x37a   :  { %v3524_v10 = vadd.f32 %v2123_v59, %v1987_v41  ;;  %v1921_v54 = vsub.f32 %v3408_v8, %v1684_v2  ;;  %v1829_v9 = vsub.f32 %v3262_v13, %v1298_v17 }
 0x37c   :  { %v2049_v1 = vand.u32 2147483647, %v1921_v54  ;;  %v1957_v48 = vand.u32 2147483647, %v1829_v9 }
 0x37d   :  { %v1495_v39 = vpop.permute.xlu1 %1494  ;;  %v1361_v34 = vpop.permute.xlu0 %1360 }
 0x37e   :  { %v3527_v18 = vadd.f32 %v2205_v35, %v2049_v1  ;;  %v1844_v4 = vsub.f32 %v3341_v43, %v1361_v34  ;;  %v1876_v53 = vsub.f32 %v3280_v29, %v1495_v39  ;;  %v2084_v6 = vadd.f32 %v2083_v58, %v1957_v48 }
 0x37f   :  { %v1891_v58 = vsub.f32 %v3323_v50, %v3519_v27 }
 0x380   :  { %v1972_v52 = vand.u32 2147483647, %v1844_v4  ;;  %v2004_v46 = vand.u32 2147483647, %v1876_v53 }
 0x381   :  { %v1755_v15 = vpop.permute.xlu1 %1754  ;;  %v1621_v16 = vpop.permute.xlu0 %1620  ;;  %v2019_v27 = vand.u32 2147483647, %v1891_v58 }
 0x382   :  { %v2104_v44 = vadd.f32 %v2103_v5, %v1972_v52  ;;  %v2146_v0 = vadd.f32 %v2145_v63, %v2004_v46  ;;  %v1938_v34 = vsub.f32 %v3316_v51, %v1755_v15  ;;  %v1906_v4 = vsub.f32 %v3381_v22, %v1621_v16 }
 0x384   :  { %v2034_v48 = vand.u32 2147483647, %v1906_v4 }
 0x385   :  { %v3530_v12 = vpop.permute.xlu1 %1561  ;;  %v1428_v19 = vpop.permute.xlu0 %1427 }
 0x386   :  { %v1892_v63 = vsub.f32 %v3323_v50, %v3530_v12 }
 0x389   :  { %v1302_v14 = vpop.permute.xlu1 %1301  ;;  %v3532_v20 = vpop.permute.xlu0 %1687 }
 0x38a   :  { %v1830_v38 = vsub.f32 %v3262_v13, %v1302_v14  ;;  %v1860_v14 = vsub.f32 %v3360_v55, %v1428_v19  ;;  %v1922_v19 = vsub.f32 %v3408_v8, %v3532_v20 }
 0x38c   :  { %v1958_v56 = vand.u32 2147483647, %v1830_v38 }
 0x38d   :  { %v1499_v30 = vpop.permute.xlu1 %1498  ;;  %v1365_v37 = vpop.permute.xlu0 %1364 }
 0x38e   :  { %v1877_v35 = vsub.f32 %v3280_v29, %v1499_v30  ;;  %v2085_v25 = vadd.f32 %v2084_v6, %v1958_v56  ;;  %v1988_v56 = vand.u32 2147483647, %v1860_v14 }
 0x390   :  { %v2005_v62 = vand.u32 2147483647, %v1877_v35 }
 0x391   :  { %v3534_v3 = vpop.permute.xlu1 %1758  ;;  %v3536_v33 = vpop.permute.xlu0 %1624 }
 0x392   :  { %v2147_v52 = vadd.f32 %v2146_v0, %v2005_v62 }
 0x395   :  { %v3538_v23 = vpop.permute.xlu1 %1565  ;;  %v3540_v26 = vpop.permute.xlu0 %1431 }
 0x399   :  { %v1306_v28 = vpop.permute.xlu1 %1305  ;;  %v3542_v49 = vpop.permute.xlu0 %1691 }
 0x39a   :  { %v1831_v59 = vsub.f32 %v3262_v13, %v1306_v28  ;;  %v1845_v13 = vsub.f32 %v3341_v43, %v1365_v37  ;;  %v2065_v37 = vand.u32 2147483647, %v1937_v40  ;;  %v1923_v14 = vsub.f32 %v3408_v8, %v3542_v49 }
 0x39c   :  { %v1959_v21 = vand.u32 2147483647, %v1831_v59  ;;  %v1973_v54 = vand.u32 2147483647, %v1845_v13  ;;  %v2166_v13 = vadd.f32 %v3510_v60, %v2019_v27 }
 0x39d   :  { %v1503_v24 = vpop.permute.xlu1 %1502  ;;  %v1369_v31 = vpop.permute.xlu0 %1368 }
 0x39e   :  { %v1878_v57 = vsub.f32 %v3280_v29, %v1503_v24  ;;  %v2086_v5 = vadd.f32 %v2085_v25, %v1959_v21  ;;  %v1846_v47 = vsub.f32 %v3341_v43, %v1369_v31  ;;  %v2105_v24 = vadd.f32 %v2104_v44, %v1973_v54 }
 0x39f   :  { %v2066_v31 = vand.u32 2147483647, %v1938_v34  ;;  %v2227_v21 = vadd.f32 %v3506_v45, %v2065_v37  ;;  %v2020_v44 = vand.u32 2147483647, %v1892_v63  ;;  %v2186_v45 = vadd.f32 %v3521_v42, %v2034_v48 }
 0x3a0   :  { %v2006_v41 = vand.u32 2147483647, %v1878_v57  ;;  %v2087_v1 = vrot.slane %v2086_v5, 4  ;;  %v1974_v36 = vand.u32 2147483647, %v1846_v47  ;;  %v2125_v47 = vadd.f32 %v3524_v10, %v1988_v56 }
 0x3a1   :  { %v3548_v32 = vpop.permute.xlu1 %1762  ;;  %v3550_v11 = vpop.permute.xlu0 %1628  ;;  %v2167_v58 = vadd.f32 %v2166_v13, %v2020_v44  ;;  %v1893_v42 = vsub.f32 %v3323_v50, %v3538_v23 }
 0x3a2   :  { %v2148_v28 = vadd.f32 %v2147_v52, %v2006_v41  ;;  %v2088_v15 = vadd.f32 %v2087_v1, %v2086_v5  ;;  %v2106_v53 = vadd.f32 %v2105_v24, %v1974_v36  ;;  %v2050_v5 = vand.u32 2147483647, %v1922_v19 }
 0x3a3   :  { %v1940_v41 = vsub.f32 %v3316_v51, %v3548_v32  ;;  %v1908_v63 = vsub.f32 %v3381_v22, %v3550_v11 }
 0x3a4   :  { %v2089_v46 = vrot.slane %v2088_v15, 2  ;;  %v2207_v4 = vadd.f32 %v3527_v18, %v2050_v5 }
 0x3a5   :  { %v3554_v61 = vpop.permute.xlu1 %1569  ;;  %v1436_v7 = vpop.permute.xlu0 %1435  ;;  %v2068_v27 = vand.u32 2147483647, %v1940_v41  ;;  %v2036_v56 = vand.u32 2147483647, %v1908_v63 }
 0x3a6   :  { %v1862_v12 = vsub.f32 %v3360_v55, %v1436_v7  ;;  %v2228_v7 = vadd.f32 %v2227_v21, %v2066_v31  ;;  %v2051_v31 = vand.u32 2147483647, %v1923_v14  ;;  %v1894_v48 = vsub.f32 %v3323_v50, %v3554_v61 }
 0x3a9   :  { %v1507_v17 = vpop.permute.xlu1 %1506  ;;  %v3562_v2 = vpop.permute.xlu0 %1695 }
 0x3aa   :  { %v1879_v39 = vsub.f32 %v3280_v29, %v1507_v17  ;;  %v1861_v29 = vsub.f32 %v3360_v55, %v3540_v26  ;;  %v1939_v26 = vsub.f32 %v3316_v51, %v3534_v3  ;;  %v1990_v3 = vand.u32 2147483647, %v1862_v12 }
 0x3ac   :  { %v2007_v30 = vand.u32 2147483647, %v1879_v39  ;;  %v1989_v20 = vand.u32 2147483647, %v1861_v29  ;;  %v2090_v39 = vadd.f32 %v2089_v46, %v2088_v15 }
 0x3ad   :  { %v1767_v9 = vpop.permute.xlu1 %1766  ;;  %v1373_v38 = vpop.permute.xlu0 %1372 }
 0x3ae   :  { %v1847_v16 = vsub.f32 %v3341_v43, %v1373_v38  ;;  %v2149_v59 = vadd.f32 %v2148_v28, %v2007_v30  ;;  %v1907_v43 = vsub.f32 %v3381_v22, %v3536_v33  ;;  %v2067_v33 = vand.u32 2147483647, %v1939_v26 }
 0x3af   :  { %v2126_v1 = vadd.f32 %v2125_v47, %v1989_v20  ;;  %v1941_v52 = vsub.f32 %v3316_v51, %v1767_v9  ;;  %v2091_v23 = vrot.slane %v2090_v39, 1  ;;  %v2021_v9 = vand.u32 2147483647, %v1893_v42 }
 0x3b0   :  { %v1975_v6 = vand.u32 2147483647, %v1847_v16  ;;  %v2150_v62 = vrot.slane %v2149_v59, 4  ;;  %v2035_v0 = vand.u32 2147483647, %v1907_v43  ;;  %v2229_v37 = vadd.f32 %v2228_v7, %v2067_v33 }
 0x3b1   :  { %v3581_v35 = vpop.permute.xlu1 %1703  ;;  %v3583_v25 = vpop.permute.xlu0 %1632  ;;  %v2127_v36 = vadd.f32 %v2126_v1, %v1990_v3  ;;  %v2069_v16 = vand.u32 2147483647, %v1941_v52  ;;  %v2092_v21 = vadd.f32 %v2091_v23, %v2090_v39 }
 0x3b2   :  { %v2107_v57 = vadd.f32 %v2106_v53, %v1975_v6  ;;  %v2151_v10 = vadd.f32 %v2150_v62, %v2149_v59  ;;  %v2187_v38 = vadd.f32 %v2186_v45, %v2035_v0  ;;  %v2230_v11 = vadd.f32 %v2229_v37, %v2068_v27 }
 0x3b3   :  { %v1924_v53 = vsub.f32 %v3408_v8, %v3562_v2  ;;  %v1909_v26 = vsub.f32 %v3381_v22, %v3583_v25  ;;  %v2168_v2 = vadd.f32 %v2167_v58, %v2021_v9  ;;  %v2208_v62 = vadd.f32 %v2207_v4, %v2051_v31 }
 0x3b4   :  { %v2108_v40 = vrot.slane %v2107_v57, 4  ;;  %v2152_v15 = vrot.slane %v2151_v10, 2  ;;  %v2231_v20 = vadd.f32 %v2230_v11, %v2069_v16 }
 0x3b5   :  { %v1771_v17 = vpop.permute.xlu1 %1770  ;;  %v1440_v54 = vpop.permute.xlu0 %1439  ;;  %v2052_v45 = vand.u32 2147483647, %v1924_v53  ;;  %v2037_v33 = vand.u32 2147483647, %v1909_v26 }
 0x3b6   :  { %v2109_v60 = vadd.f32 %v2108_v40, %v2107_v57  ;;  %v1863_v34 = vsub.f32 %v3360_v55, %v1440_v54  ;;  %v1942_v55 = vsub.f32 %v3316_v51, %v1771_v17  ;;  %v2022_v57 = vand.u32 2147483647, %v1894_v48 }
 0x3b7   :  { %v2188_v40 = vadd.f32 %v2187_v38, %v2036_v56  ;;  %v1926_v17 = vsub.f32 %v3408_v8, %v3581_v35  ;;  %v2209_v58 = vadd.f32 %v2208_v62, %v2052_v45 }
 0x3b8   :  { %v2110_v32 = vrot.slane %v2109_v60, 2  ;;  %v1991_v30 = vand.u32 2147483647, %v1863_v34  ;;  %v2070_v12 = vand.u32 2147483647, %v1942_v55  ;;  %v2169_v39 = vadd.f32 %v2168_v2, %v2022_v57 }
 0x3b9   :  { %v1775_v18 = vpop.permute.xlu1 %1774  ;;  %v1700_v28 = vpop.permute.xlu0 %1699 }
 0x3ba   :  { %v2111_v24 = vadd.f32 %v2110_v32, %v2109_v60  ;;  %v2128_v29 = vadd.f32 %v2127_v36, %v1991_v30  ;;  %v1943_v49 = vsub.f32 %v3316_v51, %v1775_v18  ;;  %v2153_v51 = vadd.f32 %v2152_v15, %v2151_v10 }
 0x3bb   :  { %v1925_v61 = vsub.f32 %v3408_v8, %v1700_v28  ;;  %v2232_v47 = vadd.f32 %v2231_v20, %v2070_v12  ;;  %v2189_v10 = vadd.f32 %v2188_v40, %v2037_v33  ;;  %v2054_v30 = vand.u32 2147483647, %v1926_v17 }
 0x3bc   :  { %v2112_v19 = vrot.slane %v2111_v24, 1  ;;  %v2129_v59 = vrot.slane %v2128_v29, 4  ;;  %v2071_v46 = vand.u32 2147483647, %v1943_v49  ;;  %v2154_v41 = vrot.slane %v2153_v51, 1 }
 0x3bd   :  { %v1637_v6 = vpop.permute.xlu0 %1636  ;;  %v2053_v1 = vand.u32 2147483647, %v1925_v61 }
 0x3be   :  { %v2113_v44 = vadd.f32 %v2112_v19, %v2111_v24  ;;  %v2130_v43 = vadd.f32 %v2129_v59, %v2128_v29  ;;  %v1910_v5 = vsub.f32 %v3381_v22, %v1637_v6  ;;  %v2233_v54 = vadd.f32 %v2232_v47, %v2071_v46 }
 0x3bf   :  { %v2155_v32 = vadd.f32 %v2154_v41, %v2153_v51  ;;  %v2210_v37 = vadd.f32 %v2209_v58, %v2053_v1 }
 0x3c0   :  { %v2249_v13 = vsel %vm1106_vm0, %v2113_v44, %v2092_v21  ;;  %v2131_v7 = vrot.slane %v2130_v43, 2  ;;  %v2038_v34 = vand.u32 2147483647, %v1910_v5 }
 0x3c1   :  { %v1574_v3 = vpop.permute.xlu0 %1573 }
 0x3c2   :  { %v2132_v25 = vadd.f32 %v2131_v7, %v2130_v43  ;;  %v1895_v0 = vsub.f32 %v3323_v50, %v1574_v3  ;;  %v2234_v50 = vrot.slane %v2233_v54, 4  ;;  %v2190_v35 = vadd.f32 %v2189_v10, %v2038_v34 }
 0x3c4   :  { %v2133_v60 = vrot.slane %v2132_v25, 1  ;;  %v2023_v42 = vand.u32 2147483647, %v1895_v0  ;;  %v2235_v29 = vadd.f32 %v2234_v50, %v2233_v54 }
 0x3c5   :  { %v1641_v4 = vpop.permute.xlu0 %1640 }
 0x3c6   :  { %v2134_v52 = vadd.f32 %v2133_v60, %v2132_v25  ;;  %v2170_v14 = vadd.f32 %v2169_v39, %v2023_v42  ;;  %v1911_v36 = vsub.f32 %v3381_v22, %v1641_v4  ;;  %v2211_v22 = vadd.f32 %v2210_v37, %v2054_v30 }
 0x3c7   :  { %v2236_v19 = vrot.slane %v2235_v29, 2 }
 0x3c8   :  { %v2250_v27 = vsel %vm1108_vm1, %v2134_v52, %v2249_v13  ;;  %v2171_v63 = vrot.slane %v2170_v14, 4  ;;  %v2039_v55 = vand.u32 2147483647, %v1911_v36  ;;  %v3723_v13 = vld [vmem:[#allocation36_spill] sm:$0xff] }
 0x3c9   :  { %v2251_v18 = vsel %vm1110_vm2, %v2155_v32, %v2250_v27  ;;  %v1708_v28 = vpop.permute.xlu0 %1707  ;;  %v2237_v21 = vadd.f32 %v2236_v19, %v2235_v29  ;;  %v2268_v7 = vmul.f32 125.0, %v3723_v13  ;;  %v2240_v5 = vmul.f32 127.0, %v3723_v13 }
 0x3ca   :  { %v2172_v38 = vadd.f32 %v2171_v63, %v2170_v14  ;;  %v2191_v23 = vadd.f32 %v2190_v35, %v2039_v55  ;;  %v1927_v24 = vsub.f32 %v3408_v8, %v1708_v28  ;;  %v2304_v40 = vmul.f32 119.0, %v3723_v13 }
 0x3cb   :  { %v2238_v20 = vrot.slane %v2237_v21, 1  ;;  %v2280_v33 = vmul.f32 123.0, %v3723_v13  ;;  %v2292_v41 = vmul.f32 121.0, %v3723_v13 }
 0x3cc   :  { %v2173_v9 = vrot.slane %v2172_v38, 2  ;;  %v2192_v15 = vrot.slane %v2191_v23, 4  ;;  %v2055_v16 = vand.u32 2147483647, %v1927_v24 }
 0x3cd   :  { %v2239_v2 = vadd.f32 %v2238_v20, %v2237_v21 }
 0x3ce   :  { %v2174_v49 = vadd.f32 %v2173_v9, %v2172_v38  ;;  %v2193_v31 = vadd.f32 %v2192_v15, %v2191_v23  ;;  %v2212_v48 = vadd.f32 %v2211_v22, %v2055_v16 }
 0x3d0   :  { %v2175_v59 = vrot.slane %v2174_v49, 1  ;;  %v2194_v11 = vrot.slane %v2193_v31, 2  ;;  %v2213_v56 = vrot.slane %v2212_v48, 4 }
 0x3d2   :  { %v2176_v53 = vadd.f32 %v2175_v59, %v2174_v49  ;;  %v2195_v12 = vadd.f32 %v2194_v11, %v2193_v31  ;;  %v2214_v6 = vadd.f32 %v2213_v56, %v2212_v48 }
 0x3d4   :  { %v2252_v44 = vsel %vm1112_vm3, %v2176_v53, %v2251_v18  ;;  %v2196_v26 = vrot.slane %v2195_v12, 1  ;;  %v2215_v8 = vrot.slane %v2214_v6, 2 }
 0x3d6   :  { %v2197_v43 = vadd.f32 %v2196_v26, %v2195_v12  ;;  %v2216_v51 = vadd.f32 %v2215_v8, %v2214_v6 }
 0x3d8   :  { %v2253_v46 = vsel %vm1114_vm4, %v2197_v43, %v2252_v44  ;;  %v2217_v61 = vrot.slane %v2216_v51, 1 }
 0x3da   :  { %v2218_v57 = vadd.f32 %v2217_v61, %v2216_v51 }
 0x3dc   :  { %v2254_v62 = vsel %vm1116_vm5, %v2218_v57, %v2253_v46 }
 0x3dd   :  { %v2255_v45 = vsel %vm1118_vm6, %v2239_v2, %v2254_v62 }
 0x3de   :  { %v2269_v47 = vsub.f32 %v2268_v7, %v2255_v45  ;;  %v2257_v3 = vsub.f32 %v2240_v5, %v2255_v45  ;;  %v2305_v25 = vsub.f32 %v2304_v40, %v2255_v45  ;;  %v2281_v0 = vsub.f32 %v2280_v33, %v2255_v45 }
 0x3df   :  { %v2293_v17 = vsub.f32 %v2292_v41, %v2255_v45 }
 0x3e0   :  { %2270 = vmax.xlane.f32.xlu1 %v2269_v47  ;;  %2258 = vmax.xlane.f32.xlu0 %v2257_v3 }
 0x3e4   :  { %2306 = vmax.xlane.f32.xlu1 %v2305_v25  ;;  %2282 = vmax.xlane.f32.xlu0 %v2281_v0 }
 0x3e8   :  { %2294 = vmax.xlane.f32.xlu0 %v2293_v17 }
 0x469   :  { %v2271_v54 = vpop.xlane.xlu1 %2270  ;;  %v2259_v1 = vpop.xlane.xlu0 %2258 }
 0x46a   :  { %v2272_v39 = vsub.f32 %v2269_v47, %v2271_v54  ;;  %v2260_v60 = vsub.f32 %v2257_v3, %v2259_v1 }
 0x46c   :  { %v2273_v34 = vmul.f32 1.442695, %v2272_v39  ;;  %v2261_v42 = vmul.f32 1.442695, %v2260_v60 }
 0x46d   :  { %v2307_v58 = vpop.xlane.xlu1 %2306  ;;  %v2283_v4 = vpop.xlane.xlu0 %2282 }
 0x46e   :  { %2366 = vpow2.f32 %v2273_v34  ;;  %v2284_v10 = vsub.f32 %v2281_v0, %v2283_v4  ;;  %v2308_v52 = vsub.f32 %v2305_v25, %v2307_v58 }
 0x46f   :  { %2368 = vpow2.f32 %v2261_v42 }
 0x470   :  { %v2285_v14 = vmul.f32 1.442695, %v2284_v10  ;;  %v2309_v30 = vmul.f32 1.442695, %v2308_v52 }
 0x471   :  { %v2295_v36 = vpop.xlane.xlu0 %2294 }
 0x472   :  { %v2296_v32 = vsub.f32 %v2293_v17, %v2295_v36  ;;  %2370 = vpow2.f32 %v2285_v14 }
 0x474   :  { %v2297_v50 = vmul.f32 1.442695, %v2296_v32 }
 0x476   :  { %2372 = vpow2.f32 %v2297_v50 }
 0x477   :  { %2374 = vpow2.f32 %v2309_v30 }
 0x47b   :  { %v2367_v37 = vpop.eup %2366 }
 0x47c   :  { %v2369_v27 = vpop.eup %2368  ;;  %2275 = vadd.xlane.f32.xlu1 %v2367_v37 }
 0x47d   :  { %2263 = vadd.xlane.f32.xlu0 %v2369_v27 }
 0x47f   :  { %v2371_v35 = vpop.eup %2370 }
 0x481   :  { %2287 = vadd.xlane.f32.xlu0 %v2371_v35 }
 0x483   :  { %v2373_v63 = vpop.eup %2372 }
 0x484   :  { %v2375_v55 = vpop.eup %2374  ;;  %2299 = vadd.xlane.f32.xlu1 %v2373_v63 }
 0x485   :  { %2311 = vadd.xlane.f32.xlu0 %v2375_v55 }
 0x505   :  { %v2276_v18 = vpop.xlane.xlu1 %2275 }
 0x506   :  { %2376 = vrcp.f32 %v2276_v18  ;;  %v2264_v28 = vpop.xlane.xlu0 %2263 }
 0x507   :  { %2378 = vrcp.f32 %v2264_v28 }
 0x50a   :  { %v2288_v38 = vpop.xlane.xlu0 %2287 }
 0x50b   :  { %2380 = vrcp.f32 %v2288_v38 }
 0x50d   :  { %v2300_v23 = vpop.xlane.xlu1 %2299 }
 0x50e   :  { %2382 = vrcp.f32 %v2300_v23  ;;  %v2312_v24 = vpop.xlane.xlu0 %2311 }
 0x50f   :  { %2384 = vrcp.f32 %v2312_v24 }
 0x513   :  { %v2377_v29 = vpop.eup %2376 }
 0x514   :  { %v2379_v9 = vpop.eup %2378  ;;  %v2278_v15 = vmul.f32 %v2377_v29, %v2367_v37 }
 0x515   :  { %v2266_v22 = vmul.f32 %v2379_v9, %v2369_v27 }
 0x517   :  { %v2279_v31 = vadd.f32 %v2278_v15, %v2266_v22 }
 0x518   :  { %v2381_v16 = vpop.eup %2380 }
 0x519   :  { %v2290_v49 = vmul.f32 %v2381_v16, %v2371_v35 }
 0x51b   :  { %v2383_v48 = vpop.eup %2382  ;;  %v2291_v11 = vadd.f32 %v2290_v49, %v2279_v31 }
 0x51c   :  { %v2385_v19 = vpop.eup %2384  ;;  %v2302_v59 = vmul.f32 %v2383_v48, %v2373_v63 }
 0x51d   :  { %v2314_v53 = vmul.f32 %v2385_v19, %v2375_v55 }
 0x51e   :  { %v2303_v56 = vadd.f32 %v2302_v59, %v2291_v11 }
 0x520   :  { %v2315_v12 = vadd.f32 %v2314_v53, %v2303_v56 }
 0x522   :  { %2317 = vst [vmem:[#allocation8 + $0x8] sm:$0xff] %v2315_v12 }
 0x523   :  { %2438 = shalt.err (!%p2435_p0)
}
 0x524   :  { %s2459_s22 = smov 128   ;;  %s2460_s23 = smov 8  }
 0x525   :  { %2329 = dma.vmem_to_hbm [thread:$0]  %s2324_s1, 256, %s3631_s2, [#allocation5], %s2459_s22, %s2459_s22, %s2460_s23  }
 0x526   :  { %2451 = dma.done.wait [#allocation5], 256  }
 0x527   :  { %2452 = vsyncadd [#allocation5], 4294967040 }
 0x528   :  { %2333 = vsyncpa [#allocation4], 1 }
 0x529   :  { %2334 = vsyncpa [#allocation7], 1 }
 0x52a   :  { %2335 = vsyncpa [#allocation5], 1 }

</bundles_post_ra>
